<compile_context>
chip_gen: v7x
topology: tpu7x:2x2x1
jax: 0.10.0
libtpu: 0.0.40
codegen_flags: <defaults>
</compile_context>

<pallas_src>
import math

import jax
import jax.numpy as jnp
from jax.experimental import pallas as pl
from jax.experimental.pallas import tpu as pltpu

IN_FEATURES = 6400   # 80 * 80, fixed by the module definition
HIDDEN = 128
TM_MAX = 256         # batch rows per grid step (bf16 x tile: 256*6400*2B ~= 3.2 MiB)
ROW_ALIGN = 16       # bf16 sublane packing -> keep batch tiles 16-row aligned


def policy_kernel(x_ref, w1_ref, b1_ref, w2_ref, b2_ref, out_ref):
    # x: (TM, 6400) bf16, w1: (6400, 128) bf16, b1: (1, 128) f32,
    # w2: (128, A) f32, b2: (1, A) f32, out: (TM, A) f32
    # Linear(6400, 128): bf16 operands, f32 MXU accumulate.
    h = jnp.dot(x_ref[...], w1_ref[...], preferred_element_type=jnp.float32)
    h = jnp.maximum(h + b1_ref[...], 0.0)

    # Linear(128, n_actions): tiny, keep it exact in f32.
    logits = jnp.dot(h, w2_ref[...], preferred_element_type=jnp.float32) + b2_ref[...]

    # Softmax over the action axis (torch.nn.Softmax() on 2-D input -> dim=1).
    m = jnp.max(logits, axis=-1, keepdims=True)
    e = jnp.exp(logits - m)
    out_ref[...] = e / jnp.sum(e, axis=-1, keepdims=True)


def _round_up(x, m):
    return (x + m - 1) // m * m


def policy_forward(frames, w1, b1, w2, b2):
    """frames: (B, 80, 80) float32  ->  action probabilities (B, n_actions) float32."""
    B = frames.shape[0]
    n_actions = w2.shape[1]

    # Glue: unsqueeze(-3) followed by view(B, -1) is just a flatten after batch.
    x = frames.reshape(B, -1).astype(jnp.float32)
    assert x.shape[1] == IN_FEATURES

    # Halve the dominant HBM byte streams (x and w1) with bf16; accumulate in f32.
    x_bf16 = x.astype(jnp.bfloat16)
    w1_bf16 = w1.astype(jnp.bfloat16)

    # Batch tiling: pad B to a tile multiple so every block is full.
    tm = min(TM_MAX, _round_up(B, ROW_ALIGN))
    Bp = _round_up(B, tm)
    if Bp != B:
        x_bf16 = jnp.pad(x_bf16, ((0, Bp - B), (0, 0)))

    b1_2d = b1.reshape(1, HIDDEN).astype(jnp.float32)
    b2_2d = b2.reshape(1, n_actions).astype(jnp.float32)
    w2_f32 = w2.astype(jnp.float32)

    out = pl.pallas_call(
        policy_kernel,
        out_shape=jax.ShapeDtypeStruct((Bp, n_actions), jnp.float32),
        grid=(Bp // tm,),
        in_specs=[
            pl.BlockSpec((tm, IN_FEATURES), lambda i: (i, 0)),          # x: streamed per tile
            pl.BlockSpec((IN_FEATURES, HIDDEN), lambda i: (0, 0)),      # w1: VMEM-resident
            pl.BlockSpec((1, HIDDEN), lambda i: (0, 0)),                # b1
            pl.BlockSpec((HIDDEN, n_actions), lambda i: (0, 0)),        # w2
            pl.BlockSpec((1, n_actions), lambda i: (0, 0)),             # b2
        ],
        out_specs=pl.BlockSpec((tm, n_actions), lambda i: (i, 0)),
        compiler_params=pltpu.CompilerParams(
            dimension_semantics=("parallel",),   # v7x: shard batch tiles over 2 TCs
            vmem_limit_bytes=24 << 20,           # ~10 MiB actually needed + headroom
        ),
    )(x_bf16, w1_bf16, b1_2d, w2_f32, b2_2d)

    return out[:B]


def init_params(key, n_actions):
    """Deterministic init mimicking torch.nn.Linear defaults (U(-1/sqrt(fan_in), 1/sqrt(fan_in)))."""
    k1, k2, k3, k4 = jax.random.split(key, 4)
    bound1 = 1.0 / math.sqrt(IN_FEATURES)
    bound2 = 1.0 / math.sqrt(HIDDEN)
    w1 = jax.random.uniform(k1, (IN_FEATURES, HIDDEN), jnp.float32, -bound1, bound1)
    b1 = jax.random.uniform(k2, (HIDDEN,), jnp.float32, -bound1, bound1)
    w2 = jax.random.uniform(k3, (HIDDEN, n_actions), jnp.float32, -bound2, bound2)
    b2 = jax.random.uniform(k4, (n_actions,), jnp.float32, -bound2, bound2)
    return w1, b1, w2, b2


if __name__ == "__main__":
    key = jax.random.PRNGKey(0)
    k_in, k_param = jax.random.split(key)

    B = 2
    n_actions = 4

    # frames: (B, 80, 80) — what the module's unsqueeze(-3)+view(B,-1) implies.
    frames = jax.random.normal(k_in, (B, 80, 80), dtype=jnp.float32)
    w1, b1, w2, b2 = init_params(k_param, n_actions)

    probs = policy_forward(frames, w1, b1, w2, b2)
    probs = jax.block_until_ready(probs)

    # Reference in plain JAX with the same bf16 rounding of the first-matmul operands.
    x = frames.reshape(B, -1)
    xb = x.astype(jnp.bfloat16).astype(jnp.float32)
    w1b = w1.astype(jnp.bfloat16).astype(jnp.float32)
    h = jnp.maximum(xb @ w1b + b1, 0.0)
    logits = h @ w2 + b2
    ref = jax.nn.softmax(logits, axis=-1)

    assert probs.shape == (B, n_actions)
    assert jnp.allclose(probs, ref, atol=2e-3, rtol=2e-3)
    assert jnp.allclose(jnp.sum(probs, axis=-1), 1.0, atol=1e-5)

    print("KERNEL_OK")
</pallas_src>

<mosaic_0001>
module attributes {stable_mosaic.version = 11 : i64} {
  func.func @policy_kernel(%arg0: i32, %arg1: memref<16x6400xbf16, #tpu.memory_space<vmem>>, %arg2: memref<6400x128xbf16, #tpu.memory_space<vmem>>, %arg3: memref<1x128xf32, #tpu.memory_space<vmem>>, %arg4: memref<128x4xf32, #tpu.memory_space<vmem>>, %arg5: memref<1x4xf32, #tpu.memory_space<vmem>>, %arg6: memref<16x4xf32, #tpu.memory_space<vmem>>) attributes {dimension_semantics = [#tpu.dimension_semantics<parallel>], iteration_bounds = array<i64: 1>, scalar_prefetch = 0 : i64, scratch_operands = 0 : i64, tpu.core_type = #tpu.core_type<tc>, window_params = [{transform_indices = @transform_0, window_bounds = array<i64: 16, 6400>}, {pipeline_mode = #tpu.pipeline_mode<synchronous>, transform_indices = @transform_1, window_bounds = array<i64: 6400, 128>}, {pipeline_mode = #tpu.pipeline_mode<synchronous>, transform_indices = @transform_2, window_bounds = array<i64: 1, 128>}, {pipeline_mode = #tpu.pipeline_mode<synchronous>, transform_indices = @transform_3, window_bounds = array<i64: 128, 4>}, {pipeline_mode = #tpu.pipeline_mode<synchronous>, transform_indices = @transform_4, window_bounds = array<i64: 1, 4>}, {transform_indices = @transform_5, window_bounds = array<i64: 16, 4>}]} {
    %c0 = arith.constant 0 : index
    %c0_0 = arith.constant 0 : index
    %0 = vector.load %arg1[%c0, %c0_0] : memref<16x6400xbf16, #tpu.memory_space<vmem>>, vector<16x6400xbf16>
    %c0_1 = arith.constant 0 : index
    %c0_2 = arith.constant 0 : index
    %1 = vector.load %arg2[%c0_1, %c0_2] : memref<6400x128xbf16, #tpu.memory_space<vmem>>, vector<6400x128xbf16>
    %cst = arith.constant dense<0.000000e+00> : vector<16x128xf32>
    %2 = tpu.matmul %0, %1, %cst {dimension_numbers = #tpu.dot_dimension_numbers<[1], [0], [0], [1], [0, 0, 1, 1], [], []>} : vector<16x6400xbf16>, vector<6400x128xbf16>, vector<16x128xf32> -> vector<16x128xf32>
    %c0_3 = arith.constant 0 : index
    %c0_4 = arith.constant 0 : index
    %3 = vector.load %arg3[%c0_3, %c0_4] : memref<1x128xf32, #tpu.memory_space<vmem>>, vector<1x128xf32>
    %4 = vector.broadcast %3 : vector<1x128xf32> to vector<16x128xf32>
    %5 = arith.addf %2, %4 : vector<16x128xf32>
    %cst_5 = arith.constant 0.000000e+00 : f32
    %6 = vector.broadcast %cst_5 : f32 to vector<16x128xf32>
    %7 = arith.maximumf %5, %6 : vector<16x128xf32>
    %c0_6 = arith.constant 0 : index
    %c0_7 = arith.constant 0 : index
    %8 = vector.load %arg4[%c0_6, %c0_7] : memref<128x4xf32, #tpu.memory_space<vmem>>, vector<128x4xf32>
    %cst_8 = arith.constant dense<0.000000e+00> : vector<16x4xf32>
    %9 = tpu.matmul %7, %8, %cst_8 {dimension_numbers = #tpu.dot_dimension_numbers<[1], [0], [0], [1], [0, 0, 1, 1], [], []>} : vector<16x128xf32>, vector<128x4xf32>, vector<16x4xf32> -> vector<16x4xf32>
    %c0_9 = arith.constant 0 : index
    %c0_10 = arith.constant 0 : index
    %10 = vector.load %arg5[%c0_9, %c0_10] : memref<1x4xf32, #tpu.memory_space<vmem>>, vector<1x4xf32>
    %11 = vector.broadcast %10 : vector<1x4xf32> to vector<16x4xf32>
    %12 = arith.addf %9, %11 : vector<16x4xf32>
    %cst_11 = arith.constant dense<0xFF800000> : vector<16xf32>
    %13 = vector.multi_reduction <maximumf>, %12, %cst_11 [1] : vector<16x4xf32> to vector<16xf32>
    %14 = vector.shape_cast %13 : vector<16xf32> to vector<16x1xf32>
    %15 = vector.broadcast %14 : vector<16x1xf32> to vector<16x4xf32>
    %16 = arith.subf %12, %15 : vector<16x4xf32>
    %17 = math.exp %16 : vector<16x4xf32>
    %cst_12 = arith.constant dense<0.000000e+00> : vector<16xf32>
    %18 = vector.multi_reduction <add>, %17, %cst_12 [1] : vector<16x4xf32> to vector<16xf32>
    %19 = vector.shape_cast %18 : vector<16xf32> to vector<16x1xf32>
    %20 = vector.broadcast %19 : vector<16x1xf32> to vector<16x4xf32>
    %21 = arith.divf %17, %20 : vector<16x4xf32>
    %c0_13 = arith.constant 0 : index
    %c0_14 = arith.constant 0 : index
    %22 = vector.load %arg6[%c0_13, %c0_14] : memref<16x4xf32, #tpu.memory_space<vmem>>, vector<16x4xf32>
    tpu.vector_store %arg6[%c0_13, %c0_14], %21 {strides = array<i32>} : memref<16x4xf32, #tpu.memory_space<vmem>>, vector<16x4xf32>,
    return
  }
  func.func @transform_0(%arg0: i32) -> (i32, i32) {
    %c0_i32 = arith.constant 0 : i32
    %c0_i32_0 = arith.constant 0 : i32
    return %arg0, %c0_i32 : i32, i32
  }
  func.func @transform_1(%arg0: i32) -> (i32, i32) {
    %c0_i32 = arith.constant 0 : i32
    %c0_i32_0 = arith.constant 0 : i32
    %c0_i32_1 = arith.constant 0 : i32
    return %c0_i32, %c0_i32_0 : i32, i32
  }
  func.func @transform_2(%arg0: i32) -> (i32, i32) {
    %c0_i32 = arith.constant 0 : i32
    %c0_i32_0 = arith.constant 0 : i32
    %c0_i32_1 = arith.constant 0 : i32
    return %c0_i32, %c0_i32_0 : i32, i32
  }
  func.func @transform_3(%arg0: i32) -> (i32, i32) {
    %c0_i32 = arith.constant 0 : i32
    %c0_i32_0 = arith.constant 0 : i32
    %c0_i32_1 = arith.constant 0 : i32
    return %c0_i32, %c0_i32_0 : i32, i32
  }
  func.func @transform_4(%arg0: i32) -> (i32, i32) {
    %c0_i32 = arith.constant 0 : i32
    %c0_i32_0 = arith.constant 0 : i32
    %c0_i32_1 = arith.constant 0 : i32
    return %c0_i32, %c0_i32_0 : i32, i32
  }
  func.func @transform_5(%arg0: i32) -> (i32, i32) {
    %c0_i32 = arith.constant 0 : i32
    %c0_i32_0 = arith.constant 0 : i32
    return %arg0, %c0_i32 : i32, i32
  }
}

</mosaic_0001>

<bundles_post_ra>
// kernel: tpu_custom_call.1
= control target key start
LH: loop header
LB: loop body
LE: loop exit
PB: predicated region body
PF: predicated region fallthrough
CT: control target
= control target key end

     0   :  { %10 = vsyncpa [#allocation3], 0  ;;  %s6578_s0 = inlined_call_operand.hbm [shape: bf16[16,6400], index: 0, kind: input, shape index: {}]   ;;  %s6579_s1 = inlined_call_operand.hbm [shape: bf16[6400,128], index: 1, kind: input, shape index: {}]   ;;  %s6580_s2 = inlined_call_operand.hbm [shape: f32[1,128], index: 2, kind: input, shape index: {}]   ;;  %s6581_s3 = inlined_call_operand.vmem [shape: f32[128,4], index: 3, kind: input, shape index: {}]   ;;  %s6582_s4 = inlined_call_operand.hbm [shape: f32[1,4], index: 4, kind: input, shape index: {}]   ;;  %s6583_s5 = inlined_call_operand.vmem [shape: f32[16,4], index: 5, kind: output, shape index: {}]  }
   0x1   :  { %11 = vsyncpa [#allocation5], 0 }
   0x2   :  { %12 = vsyncpa [#allocation8], 0  ;;  %s6408_s18 = smov [#allocation4]   ;;  %s6314_s22 = scalar_lea.hbm %s6579_s1, 51200 }
   0x3   :  { %s30_s19 = sshll.u32 %s6408_s18, 4  ;;  %p6315_p0 = scmp.ne.s32.totalorder %s6579_s1, %s6314_s22  ;;  %s31_s19 = int_to_ptr.vmem [resolvable:$true] %s30_s19 }
   0x4   :  { %p6318_p1 = scmp.lt.u32.totalorder %s6314_s22, %s6579_s1 }
   0x6   :  { %p6320_p2 = pnand %p6318_p1, %p6315_p0 }
   0x8   :  { %6323 = shalt.err (!%p6320_p2)
}
   0x9   :  { %s6324_s27 = scalar_lea.vmem %s31_s19, 51200  ;;  %p6329_p4 = scmp.lt.s32.totalorder %s31_s19, %s31_s19 }
   0xa   :  { %p6325_p3 = scmp.ne.s32.totalorder %s31_s19, %s6324_s27  ;;  %p6330_p5 = scmp.lt.s32.totalorder %s6324_s27, %s6324_s27 }
   0xc   :  { %p6331_p6 = por %p6330_p5, %p6329_p4 }
   0xe   :  { %p6332_p7 = pnand %p6331_p6, %p6325_p3 }
  0x10   :  { %6335 = shalt.err (!%p6332_p7)
}
  0x11   :  { %s6409_s28 = smov 64   ;;  %s6410_s29 = smov 4  }
  0x12   :  { %36 = dma.hbm_to_vmem [thread:$0]  %s6579_s1, 51200, %s31_s19, [#allocation5], %s6409_s28, %s6409_s28, %s6410_s29  }
  0x13   :  { %s6411_s7 = smov [#allocation2]   ;;  %s6336_s11 = scalar_lea.hbm %s6578_s0, 6400 }
  0x14   :  { %s18_s8 = sshll.u32 %s6411_s7, 4  ;;  %p6337_p8 = scmp.ne.s32.totalorder %s6578_s0, %s6336_s11  ;;  %s19_s8 = int_to_ptr.vmem [resolvable:$true] %s18_s8 }
  0x15   :  { %p6340_p9 = scmp.lt.u32.totalorder %s6336_s11, %s6578_s0 }
  0x17   :  { %p6342_p10 = pnand %p6340_p9, %p6337_p8 }
  0x19   :  { %6345 = shalt.err (!%p6342_p10)
}
  0x1a   :  { %s6346_s16 = scalar_lea.vmem %s19_s8, 6400  ;;  %p6351_p12 = scmp.lt.s32.totalorder %s19_s8, %s19_s8 }
  0x1b   :  { %p6347_p11 = scmp.ne.s32.totalorder %s19_s8, %s6346_s16  ;;  %p6352_p13 = scmp.lt.s32.totalorder %s6346_s16, %s6346_s16 }
  0x1d   :  { %p6353_p0 = por %p6352_p13, %p6351_p12 }
  0x1f   :  { %p6354_p1 = pnand %p6353_p0, %p6347_p11 }
  0x21   :  { %6357 = shalt.err (!%p6354_p1)
}
  0x22   :  { %s6412_s1 = smov 3200   ;;  %s6413_s17 = smov 200  }
  0x23   :  { %24 = dma.hbm_to_vmem [thread:$0]  %s6578_s0, 6400, %s19_s8, [#allocation3], %s6412_s1, %s6412_s1, %s6413_s17  }
  0x24   :  { %s6414_s20 = smov [#allocation6]   ;;  %s6415_s22 = smov [#allocation7]  }
  0x25   :  { %s43_s21 = sshll.u32 %s6414_s20, 4  ;;  %s55_s23 = sshll.u32 %s6415_s22, 4  ;;  %s44_s21 = int_to_ptr.vmem [resolvable:$true] %s43_s21  ;;  %s56_s23 = int_to_ptr.vmem [resolvable:$true] %s55_s23 }
  0x26   :  { %s6358_s26 = scalar_lea.hbm %s6580_s2, 16 }
  0x27   :  { %p6359_p2 = scmp.ne.s32.totalorder %s6580_s2, %s6358_s26  ;;  %p6362_p3 = scmp.lt.u32.totalorder %s6358_s26, %s6580_s2 }
  0x29   :  { %p6364_p4 = pnand %p6362_p3, %p6359_p2 }
  0x2b   :  { %6367 = shalt.err (!%p6364_p4)
}
  0x2c   :  { %s6368_s0 = scalar_lea.vmem %s44_s21, 16  ;;  %s6372_s6 = scalar_lea.vmem %s44_s21, 32 }
  0x2d   :  { %p6369_p5 = scmp.ne.s32.totalorder %s44_s21, %s6368_s0  ;;  %p6373_p6 = scmp.lt.s32.totalorder %s44_s21, %s44_s21 }
  0x2e   :  { %p6374_p7 = scmp.lt.s32.totalorder %s6372_s6, %s6368_s0 }
  0x30   :  { %p6375_p8 = por %p6374_p7, %p6373_p6 }
  0x32   :  { %p6376_p9 = pnand %p6375_p8, %p6369_p5 }
  0x34   :  { %6379 = shalt.err (!%p6376_p9)
}
  0x35   :  { %46 = dma.hbm_to_vmem [thread:$0]  %s6580_s2, 16, %s44_s21, [#allocation5]  }
  0x36   :  { %s6380_s11 = scalar_lea.hbm %s6582_s4, 16 }
  0x37   :  { %p6381_p10 = scmp.ne.s32.totalorder %s6582_s4, %s6380_s11  ;;  %p6384_p11 = scmp.lt.u32.totalorder %s6380_s11, %s6582_s4 }
  0x39   :  { %p6386_p12 = pnand %p6384_p11, %p6381_p10 }
  0x3b   :  { %6389 = shalt.err (!%p6386_p12)
}
  0x3c   :  { %s6390_s16 = scalar_lea.vmem %s56_s23, 16  ;;  %s6394_s1 = scalar_lea.vmem %s56_s23, 32 }
  0x3d   :  { %p6391_p13 = scmp.ne.s32.totalorder %s56_s23, %s6390_s16  ;;  %p6395_p0 = scmp.lt.s32.totalorder %s56_s23, %s56_s23 }
  0x3e   :  { %p6396_p1 = scmp.lt.s32.totalorder %s6394_s1, %s6390_s16 }
  0x40   :  { %p6397_p2 = por %p6396_p1, %p6395_p0 }
  0x42   :  { %p6398_p3 = pnand %p6397_p2, %p6391_p13 }
  0x44   :  { %6401 = shalt.err (!%p6398_p3)
}
  0x45   :  { %58 = dma.hbm_to_vmem [thread:$0]  %s6582_s4, 16, %s56_s23, [#allocation8]  }
  0x46   :  { %6402 = dma.done.wait [#allocation3], 6400  }
  0x47   :  { %6403 = vsyncadd [#allocation3], 4294960896 }
  0x48   :  { %6404 = dma.done.wait [#allocation5], 51216  }
  0x49   :  { %6405 = vsyncadd [#allocation5], 4294916080 }
  0x4a   :  { %6406 = dma.done.wait [#allocation8], 16  }
  0x4b   :  { %6407 = vsyncadd [#allocation8], 4294967280  ;;  %v5831_v0 = vld [vmem:[#allocation4 + $0x40] sm:$0xff]   ;;  %v5835_v4 = vld [vmem:[#allocation4 + $0x48] sm:$0xff]   ;;  %vm4704_vm0 = vcmask 31744  }
  0x4c   :  { %v5832_v1 = vld [vmem:[#allocation4] sm:$0xff]   ;;  %5188 = vmatprep.subr.bf16.mxu0 %v5831_v0  ;;  %v5836_v5 = vld [vmem:[#allocation4 + $0x8] sm:$0xff]   ;;  %v5839_v8 = vld [vmem:[#allocation4 + $0x50] sm:$0xff]  }
  0x4d   :  { %v5833_v2 = vld [vmem:[#allocation4 + $0xc0] sm:$0xff]   ;;  %5189 = vmatpush3.bf16.msra.mxu0 %v5832_v1  ;;  %v5837_v6 = vld [vmem:[#allocation4 + $0xc8] sm:$0xff]   ;;  %v5840_v9 = vld [vmem:[#allocation4 + $0x10] sm:$0xff]  }
  0x4e   :  { %v5834_v3 = vld [vmem:[#allocation4 + $0x80] sm:$0xff]   ;;  %5210 = vmatprep.subr.bf16.mxu1 %v5833_v2  ;;  %5190 = vmatprep.subr.bf16.mxu0 %v5835_v4  ;;  %v5838_v7 = vld [vmem:[#allocation4 + $0x88] sm:$0xff]   ;;  %v5841_v10 = vld [vmem:[#allocation4 + $0xd0] sm:$0xff]  }
  0x4f   :  { %5211 = vmatpush3.bf16.msra.mxu1 %v5834_v3  ;;  %v5842_v11 = vld [vmem:[#allocation4 + $0x90] sm:$0xff]   ;;  %v5843_v12 = vld [vmem:[#allocation4 + $0x58] sm:$0xff]   ;;  %v5847_v16 = vld [vmem:[#allocation4 + $0x60] sm:$0xff]  }
  0x50   :  { %5212 = vmatprep.subr.bf16.mxu1 %v5837_v6  ;;  %v5844_v13 = vld [vmem:[#allocation4 + $0x18] sm:$0xff]   ;;  %v5848_v17 = vld [vmem:[#allocation4 + $0x20] sm:$0xff]   ;;  %v5851_v20 = vld [vmem:[#allocation4 + $0x68] sm:$0xff]  }
  0x51   :  { %5191 = vmatpush3.bf16.msra.mxu0 %v5836_v5  ;;  %v5845_v14 = vld [vmem:[#allocation4 + $0xd8] sm:$0xff]   ;;  %v5849_v18 = vld [vmem:[#allocation4 + $0xe0] sm:$0xff]   ;;  %v5852_v21 = vld [vmem:[#allocation4 + $0x28] sm:$0xff]  }
  0x52   :  { %5192 = vmatprep.subr.bf16.mxu0 %v5839_v8  ;;  %v5846_v15 = vld [vmem:[#allocation4 + $0x98] sm:$0xff]   ;;  %v5850_v19 = vld [vmem:[#allocation4 + $0xa0] sm:$0xff]   ;;  %v5853_v22 = vld [vmem:[#allocation4 + $0xe8] sm:$0xff]  }
  0x53   :  { %5213 = vmatpush3.bf16.msra.mxu1 %v5838_v7  ;;  %v5854_v23 = vld [vmem:[#allocation4 + $0xa8] sm:$0xff]   ;;  %v5855_v24 = vld [vmem:[#allocation4 + $0x70] sm:$0xff]   ;;  %v5859_v28 = vld [vmem:[#allocation4 + $0x78] sm:$0xff]  }
  0x54   :  { %5214 = vmatprep.subr.bf16.mxu1 %v5841_v10  ;;  %v5856_v25 = vld [vmem:[#allocation4 + $0x30] sm:$0xff]   ;;  %v5860_v29 = vld [vmem:[#allocation4 + $0x38] sm:$0xff]   ;;  %v5866_v34 = vld [vmem:[#allocation4 + $0x140] sm:$0xff]  }
  0x55   :  { %5193 = vmatpush3.bf16.msra.mxu0 %v5840_v9  ;;  %v5857_v26 = vld [vmem:[#allocation4 + $0xf0] sm:$0xff]   ;;  %v5861_v30 = vld [vmem:[#allocation4 + $0xf8] sm:$0xff]   ;;  %v5870_v37 = vld [vmem:[#allocation4 + $0x100] sm:$0xff]  }
  0x56   :  { %5194 = vmatprep.subr.bf16.mxu0 %v5843_v12  ;;  %v5858_v27 = vld [vmem:[#allocation4 + $0xb0] sm:$0xff]   ;;  %v5865_v33 = vld [vmem:[#allocation4 + $0xb8] sm:$0xff]   ;;  %v5871_v38 = vld [vmem:[#allocation4 + $0x1c0] sm:$0xff]  }
  0x57   :  { %5215 = vmatpush3.bf16.msra.mxu1 %v5842_v11  ;;  %v5862_v31 = vld [vmem:[#allocation2] ss:$200 sps:$4 sm:$0xff]   ;;  %v5864_v32 = vld [vmem:[#allocation2 + $0x4] ss:$200 sps:$4 sm:$0xff]   ;;  %v5872_v39 = vld [vmem:[#allocation4 + $0x180] sm:$0xff]  }
  0x58   :  { %5216 = vmatprep.subr.bf16.mxu1 %v5845_v14  ;;  %3611 = vmatprep.mubr.bf16.mxu0 %v5864_v32  ;;  %v5867_v35 = vld [vmem:[#allocation2 + $0x8] ss:$200 sps:$4 sm:$0xff]   ;;  %v5869_v36 = vld [vmem:[#allocation2 + $0xc] ss:$200 sps:$4 sm:$0xff]   ;;  %v5873_v40 = vld [vmem:[#allocation4 + $0x148] sm:$0xff]  }
  0x59   :  { %5195 = vmatpush3.bf16.msra.mxu0 %v5844_v13  ;;  %3652 = vmatprep.mubr.bf16.mxu1 %v5869_v36  ;;  %v5874_v41 = vld [vmem:[#allocation4 + $0x108] sm:$0xff]   ;;  %v5877_v44 = vld [vmem:[#allocation4 + $0x150] sm:$0xff]   ;;  %v5881_v48 = vld [vmem:[#allocation4 + $0x158] sm:$0xff]  }
  0x5a   :  { %5196 = vmatprep.subr.bf16.mxu0 %v5847_v16  ;;  %v5875_v42 = vld [vmem:[#allocation4 + $0x1c8] sm:$0xff]   ;;  %v5878_v45 = vld [vmem:[#allocation4 + $0x110] sm:$0xff]   ;;  %v5882_v49 = vld [vmem:[#allocation4 + $0x118] sm:$0xff]  }
  0x5b   :  { %5217 = vmatpush3.bf16.msra.mxu1 %v5846_v15  ;;  %v5876_v43 = vld [vmem:[#allocation4 + $0x188] sm:$0xff]   ;;  %v5879_v46 = vld [vmem:[#allocation4 + $0x1d0] sm:$0xff]   ;;  %v5883_v50 = vld [vmem:[#allocation4 + $0x1d8] sm:$0xff]  }
  0x5c   :  { %5218 = vmatprep.subr.bf16.mxu1 %v5849_v18  ;;  %v5880_v47 = vld [vmem:[#allocation4 + $0x190] sm:$0xff]   ;;  %v5884_v51 = vld [vmem:[#allocation4 + $0x198] sm:$0xff]   ;;  %v5885_v52 = vld [vmem:[#allocation4 + $0x160] sm:$0xff]  }
  0x5d   :  { %5197 = vmatpush3.bf16.msra.mxu0 %v5848_v17  ;;  %v5886_v53 = vld [vmem:[#allocation4 + $0x120] sm:$0xff]   ;;  %v5889_v56 = vld [vmem:[#allocation4 + $0x168] sm:$0xff]   ;;  %v5893_v60 = vld [vmem:[#allocation4 + $0x170] sm:$0xff]  }
  0x5e   :  { %5198 = vmatprep.subr.bf16.mxu0 %v5851_v20  ;;  %v5887_v54 = vld [vmem:[#allocation4 + $0x1e0] sm:$0xff]   ;;  %v5890_v57 = vld [vmem:[#allocation4 + $0x128] sm:$0xff]   ;;  %v5894_v61 = vld [vmem:[#allocation4 + $0x130] sm:$0xff]  }
  0x5f   :  { %5219 = vmatpush3.bf16.msra.mxu1 %v5850_v19  ;;  %v5888_v55 = vld [vmem:[#allocation4 + $0x1a0] sm:$0xff]   ;;  %v5891_v58 = vld [vmem:[#allocation4 + $0x1e8] sm:$0xff]   ;;  %v5895_v62 = vld [vmem:[#allocation4 + $0x1f0] sm:$0xff]  }
  0x60   :  { %5220 = vmatprep.subr.bf16.mxu1 %v5853_v22  ;;  %v5892_v59 = vld [vmem:[#allocation4 + $0x1a8] sm:$0xff]   ;;  %v5896_v63 = vld [vmem:[#allocation4 + $0x1b0] sm:$0xff]   ;;  %v5897_v0 = vld [vmem:[#allocation4 + $0x178] sm:$0xff]  }
  0x61   :  { %5199 = vmatpush3.bf16.msra.mxu0 %v5852_v21  ;;  %v5898_v1 = vld [vmem:[#allocation4 + $0x138] sm:$0xff]   ;;  %v5900_v3 = vld [vmem:[#allocation2 + $0x10] ss:$200 sps:$4 sm:$0xff]   ;;  %v5902_v4 = vld [vmem:[#allocation2 + $0x14] ss:$200 sps:$4 sm:$0xff]  }
  0x62   :  { %5200 = vmatprep.subr.bf16.mxu0 %v5855_v24  ;;  %v5899_v2 = vld [vmem:[#allocation4 + $0x1f8] sm:$0xff]   ;;  %v5904_v6 = vld [vmem:[#allocation4 + $0x240] sm:$0xff]   ;;  %v5905_v7 = vld [vmem:[#allocation2 + $0x18] ss:$200 sps:$4 sm:$0xff]  }
  0x63   :  { %5221 = vmatpush3.bf16.msra.mxu1 %v5854_v23  ;;  %v5903_v5 = vld [vmem:[#allocation4 + $0x1b8] sm:$0xff]   ;;  %v5907_v8 = vld [vmem:[#allocation2 + $0x1c] ss:$200 sps:$4 sm:$0xff]   ;;  %v5908_v9 = vld [vmem:[#allocation4 + $0x200] sm:$0xff]  }
  0x64   :  { %5222 = vmatprep.subr.bf16.mxu1 %v5857_v26  ;;  %v5909_v10 = vld [vmem:[#allocation4 + $0x2c0] sm:$0xff]   ;;  %v5911_v12 = vld [vmem:[#allocation4 + $0x248] sm:$0xff]   ;;  %v5915_v16 = vld [vmem:[#allocation4 + $0x250] sm:$0xff]  }
  0x65   :  { %5201 = vmatpush3.bf16.msra.mxu0 %v5856_v25  ;;  %v5910_v11 = vld [vmem:[#allocation4 + $0x280] sm:$0xff]   ;;  %v5912_v13 = vld [vmem:[#allocation4 + $0x208] sm:$0xff]   ;;  %v5916_v17 = vld [vmem:[#allocation4 + $0x210] sm:$0xff]  }
  0x66   :  { %5202 = vmatprep.subr.bf16.mxu0 %v5859_v28  ;;  %v5913_v14 = vld [vmem:[#allocation4 + $0x2c8] sm:$0xff]   ;;  %v5917_v18 = vld [vmem:[#allocation4 + $0x2d0] sm:$0xff]   ;;  %v5919_v20 = vld [vmem:[#allocation4 + $0x258] sm:$0xff]  }
  0x67   :  { %5223 = vmatpush3.bf16.msra.mxu1 %v5858_v27  ;;  %v5914_v15 = vld [vmem:[#allocation4 + $0x288] sm:$0xff]   ;;  %v5918_v19 = vld [vmem:[#allocation4 + $0x290] sm:$0xff]   ;;  %v5920_v21 = vld [vmem:[#allocation4 + $0x218] sm:$0xff]  }
  0x68   :  { %5224 = vmatprep.subr.bf16.mxu1 %v5861_v30  ;;  %v5921_v22 = vld [vmem:[#allocation4 + $0x2d8] sm:$0xff]   ;;  %v5923_v24 = vld [vmem:[#allocation4 + $0x260] sm:$0xff]   ;;  %v5927_v28 = vld [vmem:[#allocation4 + $0x268] sm:$0xff]  }
  0x69   :  { %5203 = vmatpush3.bf16.msra.mxu0 %v5860_v29  ;;  %v5922_v23 = vld [vmem:[#allocation4 + $0x298] sm:$0xff]   ;;  %v5924_v25 = vld [vmem:[#allocation4 + $0x220] sm:$0xff]   ;;  %v5928_v29 = vld [vmem:[#allocation4 + $0x228] sm:$0xff]  }
  0x6a   :  { %5232 = vmatprep.subr.bf16.mxu0 %v5866_v34  ;;  %v5925_v26 = vld [vmem:[#allocation4 + $0x2e0] sm:$0xff]   ;;  %v5929_v30 = vld [vmem:[#allocation4 + $0x2e8] sm:$0xff]   ;;  %v5931_v32 = vld [vmem:[#allocation4 + $0x270] sm:$0xff]  }
  0x6b   :  { %5225 = vmatpush3.bf16.msra.mxu1 %v5865_v33  ;;  %v5926_v27 = vld [vmem:[#allocation4 + $0x2a0] sm:$0xff]   ;;  %v5932_v33 = vld [vmem:[#allocation4 + $0x230] sm:$0xff]   ;;  %v5935_v36 = vld [vmem:[#allocation4 + $0x278] sm:$0xff]  }
  0x6c   :  { %3612 = vmatmul.mubr.bf16.vlgmr.msra.gmra.mrb[0].mxu0 %v5862_v31  ;;  %5254 = vmatprep.subr.bf16.mxu1 %v5871_v38  ;;  %v5930_v31 = vld [vmem:[#allocation4 + $0x2a8] sm:$0xff]   ;;  %v5933_v34 = vld [vmem:[#allocation4 + $0x2f0] sm:$0xff]   ;;  %v5937_v38 = vld [vmem:[#allocation4 + $0x2f8] sm:$0xff]  }
  0x6d   :  { %5233 = vmatpush3.bf16.msra.mxu0 %v5870_v37  ;;  %3693 = vmatprep.mubr.bf16.mxu0 %v5902_v4  ;;  %v5936_v37 = vld [vmem:[#allocation4 + $0x238] sm:$0xff]   ;;  %v5969_v4 = vld [vmem:[#allocation4 + $0x370] sm:$0xff]  }
  0x6e   :  { %3653 = vmatmul.mubr.bf16.vlgmr.msra.gmra.mrb[0].mxu1 %v5867_v35  ;;  %5234 = vmatprep.subr.bf16.mxu0 %v5873_v40  ;;  %v5934_v35 = vld [vmem:[#allocation4 + $0x2b0] sm:$0xff]  }
  0x6f   :  { %5255 = vmatpush3.bf16.msra.mxu1 %v5872_v39  ;;  %3734 = vmatprep.mubr.bf16.mxu1 %v5907_v8  ;;  %v5938_v39 = vld [vmem:[#allocation2 + $0x20] ss:$200 sps:$4 sm:$0xff]   ;;  %v5940_v40 = vld [vmem:[#allocation2 + $0x24] ss:$200 sps:$4 sm:$0xff]  }
  0x70   :  { %5256 = vmatprep.subr.bf16.mxu1 %v5875_v42  ;;  %v5942_v42 = vld [vmem:[#allocation4 + $0x340] sm:$0xff]   ;;  %v5973_v8 = vld [vmem:[#allocation4 + $0x378] sm:$0xff]  }
  0x71   :  { %5235 = vmatpush3.bf16.msra.mxu0 %v5874_v41  ;;  %v5941_v41 = vld [vmem:[#allocation4 + $0x2b8] sm:$0xff]  }
  0x72   :  { %5236 = vmatprep.subr.bf16.mxu0 %v5877_v44  ;;  %v5945_v44 = vld [vmem:[#allocation2 + $0x2c] ss:$200 sps:$4 sm:$0xff]  }
  0x73   :  { %5257 = vmatpush3.bf16.msra.mxu1 %v5876_v43  ;;  %v5943_v43 = vld [vmem:[#allocation2 + $0x28] ss:$200 sps:$4 sm:$0xff]  }
  0x74   :  { %5258 = vmatprep.subr.bf16.mxu1 %v5879_v46  ;;  %v5947_v46 = vld [vmem:[#allocation4 + $0x3c0] sm:$0xff]  }
  0x75   :  { %5237 = vmatpush3.bf16.msra.mxu0 %v5878_v45  ;;  %v5946_v45 = vld [vmem:[#allocation4 + $0x300] sm:$0xff]  }
  0x76   :  { %5238 = vmatprep.subr.bf16.mxu0 %v5881_v48  ;;  %v5949_v48 = vld [vmem:[#allocation4 + $0x348] sm:$0xff]  }
  0x77   :  { %5259 = vmatpush3.bf16.msra.mxu1 %v5880_v47  ;;  %v5948_v47 = vld [vmem:[#allocation4 + $0x380] sm:$0xff]  }
  0x78   :  { %5260 = vmatprep.subr.bf16.mxu1 %v5883_v50  ;;  %v5951_v50 = vld [vmem:[#allocation4 + $0x3c8] sm:$0xff]  }
  0x79   :  { %5239 = vmatpush3.bf16.msra.mxu0 %v5882_v49  ;;  %v5950_v49 = vld [vmem:[#allocation4 + $0x308] sm:$0xff]  }
  0x7a   :  { %5240 = vmatprep.subr.bf16.mxu0 %v5885_v52  ;;  %v5953_v52 = vld [vmem:[#allocation4 + $0x350] sm:$0xff]  }
  0x7b   :  { %5261 = vmatpush3.bf16.msra.mxu1 %v5884_v51  ;;  %v5952_v51 = vld [vmem:[#allocation4 + $0x388] sm:$0xff]  }
  0x7c   :  { %5262 = vmatprep.subr.bf16.mxu1 %v5887_v54  ;;  %v5955_v54 = vld [vmem:[#allocation4 + $0x3d0] sm:$0xff]  }
  0x7d   :  { %5241 = vmatpush3.bf16.msra.mxu0 %v5886_v53  ;;  %v5954_v53 = vld [vmem:[#allocation4 + $0x310] sm:$0xff]  }
  0x7e   :  { %5242 = vmatprep.subr.bf16.mxu0 %v5889_v56  ;;  %v5957_v56 = vld [vmem:[#allocation4 + $0x358] sm:$0xff]  }
  0x7f   :  { %5263 = vmatpush3.bf16.msra.mxu1 %v5888_v55  ;;  %v5956_v55 = vld [vmem:[#allocation4 + $0x390] sm:$0xff]  }
  0x80   :  { %5264 = vmatprep.subr.bf16.mxu1 %v5891_v58  ;;  %v5959_v58 = vld [vmem:[#allocation4 + $0x3d8] sm:$0xff]  }
  0x81   :  { %5243 = vmatpush3.bf16.msra.mxu0 %v5890_v57  ;;  %v5958_v57 = vld [vmem:[#allocation4 + $0x318] sm:$0xff]  }
  0x82   :  { %5244 = vmatprep.subr.bf16.mxu0 %v5893_v60  ;;  %v5961_v60 = vld [vmem:[#allocation4 + $0x360] sm:$0xff]  }
  0x83   :  { %5265 = vmatpush3.bf16.msra.mxu1 %v5892_v59  ;;  %v5960_v59 = vld [vmem:[#allocation4 + $0x398] sm:$0xff]  }
  0x84   :  { %5266 = vmatprep.subr.bf16.mxu1 %v5895_v62  ;;  %v5963_v62 = vld [vmem:[#allocation4 + $0x3e0] sm:$0xff]  }
  0x85   :  { %5245 = vmatpush3.bf16.msra.mxu0 %v5894_v61  ;;  %v5962_v61 = vld [vmem:[#allocation4 + $0x320] sm:$0xff]  }
  0x86   :  { %5246 = vmatprep.subr.bf16.mxu0 %v5897_v0  ;;  %v5965_v0 = vld [vmem:[#allocation4 + $0x368] sm:$0xff]  }
  0x87   :  { %5267 = vmatpush3.bf16.msra.mxu1 %v5896_v63  ;;  %v5964_v63 = vld [vmem:[#allocation4 + $0x3a0] sm:$0xff]  }
  0x88   :  { %5268 = vmatprep.subr.bf16.mxu1 %v5899_v2  ;;  %v5967_v2 = vld [vmem:[#allocation4 + $0x3e8] sm:$0xff]  }
  0x89   :  { %5247 = vmatpush3.bf16.msra.mxu0 %v5898_v1  ;;  %v5966_v1 = vld [vmem:[#allocation4 + $0x328] sm:$0xff]  }
  0x8a   :  { %5276 = vmatprep.subr.bf16.mxu0 %v5904_v6  ;;  %v5971_v6 = vld [vmem:[#allocation4 + $0x3f0] sm:$0xff]  }
  0x8b   :  { %5269 = vmatpush3.bf16.msra.mxu1 %v5903_v5  ;;  %v5970_v5 = vld [vmem:[#allocation4 + $0x330] sm:$0xff]  }
  0x8c   :  { %3694 = vmatmul.mubr.bf16.vlgmr.msra.gmra.mrb[4].mxu0 %v5900_v3  ;;  %5298 = vmatprep.subr.bf16.mxu1 %v5909_v10  ;;  %v5968_v3 = vld [vmem:[#allocation4 + $0x3a8] sm:$0xff]   ;;  %v5975_v10 = vld [vmem:[#allocation4 + $0x3f8] sm:$0xff]  }
  0x8d   :  { %5277 = vmatpush3.bf16.msra.mxu0 %v5908_v9  ;;  %3775 = vmatprep.mubr.bf16.mxu0 %v5940_v40  ;;  %v5974_v9 = vld [vmem:[#allocation4 + $0x338] sm:$0xff]   ;;  %v6007_v40 = vld [vmem:[#allocation4 + $0x470] sm:$0xff]  }
  0x8e   :  { %3735 = vmatmul.mubr.bf16.vlgmr.msra.gmra.mrb[4].mxu1 %v5905_v7  ;;  %5278 = vmatprep.subr.bf16.mxu0 %v5911_v12  ;;  %v5972_v7 = vld [vmem:[#allocation4 + $0x3b0] sm:$0xff]   ;;  %v5978_v12 = vld [vmem:[#allocation2 + $0x34] ss:$200 sps:$4 sm:$0xff]  }
  0x8f   :  { %5299 = vmatpush3.bf16.msra.mxu1 %v5910_v11  ;;  %3816 = vmatprep.mubr.bf16.mxu1 %v5945_v44  ;;  %v5976_v11 = vld [vmem:[#allocation2 + $0x30] ss:$200 sps:$4 sm:$0xff]   ;;  %v6011_v44 = vld [vmem:[#allocation4 + $0x478] sm:$0xff]  }
  0x90   :  { %5300 = vmatprep.subr.bf16.mxu1 %v5913_v14  ;;  %v5980_v14 = vld [vmem:[#allocation4 + $0x440] sm:$0xff]  }
  0x91   :  { %5279 = vmatpush3.bf16.msra.mxu0 %v5912_v13  ;;  %v5979_v13 = vld [vmem:[#allocation4 + $0x3b8] sm:$0xff]  }
  0x92   :  { %5280 = vmatprep.subr.bf16.mxu0 %v5915_v16  ;;  %v5983_v16 = vld [vmem:[#allocation2 + $0x3c] ss:$200 sps:$4 sm:$0xff]  }
  0x93   :  { %5301 = vmatpush3.bf16.msra.mxu1 %v5914_v15  ;;  %v5981_v15 = vld [vmem:[#allocation2 + $0x38] ss:$200 sps:$4 sm:$0xff]  }
  0x94   :  { %5302 = vmatprep.subr.bf16.mxu1 %v5917_v18  ;;  %v5985_v18 = vld [vmem:[#allocation4 + $0x4c0] sm:$0xff]  }
  0x95   :  { %5281 = vmatpush3.bf16.msra.mxu0 %v5916_v17  ;;  %v5984_v17 = vld [vmem:[#allocation4 + $0x400] sm:$0xff]  }
  0x96   :  { %5282 = vmatprep.subr.bf16.mxu0 %v5919_v20  ;;  %v5987_v20 = vld [vmem:[#allocation4 + $0x448] sm:$0xff]  }
  0x97   :  { %5303 = vmatpush3.bf16.msra.mxu1 %v5918_v19  ;;  %v5986_v19 = vld [vmem:[#allocation4 + $0x480] sm:$0xff]  }
  0x98   :  { %5304 = vmatprep.subr.bf16.mxu1 %v5921_v22  ;;  %v5989_v22 = vld [vmem:[#allocation4 + $0x4c8] sm:$0xff]  }
  0x99   :  { %5283 = vmatpush3.bf16.msra.mxu0 %v5920_v21  ;;  %v5988_v21 = vld [vmem:[#allocation4 + $0x408] sm:$0xff]  }
  0x9a   :  { %5284 = vmatprep.subr.bf16.mxu0 %v5923_v24  ;;  %v5991_v24 = vld [vmem:[#allocation4 + $0x450] sm:$0xff]  }
  0x9b   :  { %5305 = vmatpush3.bf16.msra.mxu1 %v5922_v23  ;;  %v5990_v23 = vld [vmem:[#allocation4 + $0x488] sm:$0xff]  }
  0x9c   :  { %5306 = vmatprep.subr.bf16.mxu1 %v5925_v26  ;;  %v5993_v26 = vld [vmem:[#allocation4 + $0x4d0] sm:$0xff]  }
  0x9d   :  { %5285 = vmatpush3.bf16.msra.mxu0 %v5924_v25  ;;  %v5992_v25 = vld [vmem:[#allocation4 + $0x410] sm:$0xff]  }
  0x9e   :  { %5286 = vmatprep.subr.bf16.mxu0 %v5927_v28  ;;  %v5995_v28 = vld [vmem:[#allocation4 + $0x458] sm:$0xff]  }
  0x9f   :  { %5307 = vmatpush3.bf16.msra.mxu1 %v5926_v27  ;;  %v5994_v27 = vld [vmem:[#allocation4 + $0x490] sm:$0xff]  }
  0xa0   :  { %5308 = vmatprep.subr.bf16.mxu1 %v5929_v30  ;;  %v5997_v30 = vld [vmem:[#allocation4 + $0x4d8] sm:$0xff]  }
  0xa1   :  { %5287 = vmatpush3.bf16.msra.mxu0 %v5928_v29  ;;  %v5996_v29 = vld [vmem:[#allocation4 + $0x418] sm:$0xff]  }
  0xa2   :  { %5288 = vmatprep.subr.bf16.mxu0 %v5931_v32  ;;  %v5999_v32 = vld [vmem:[#allocation4 + $0x460] sm:$0xff]  }
  0xa3   :  { %5309 = vmatpush3.bf16.msra.mxu1 %v5930_v31  ;;  %v5998_v31 = vld [vmem:[#allocation4 + $0x498] sm:$0xff]  }
  0xa4   :  { %5310 = vmatprep.subr.bf16.mxu1 %v5933_v34  ;;  %v6001_v34 = vld [vmem:[#allocation4 + $0x4e0] sm:$0xff]  }
  0xa5   :  { %5289 = vmatpush3.bf16.msra.mxu0 %v5932_v33  ;;  %v6000_v33 = vld [vmem:[#allocation4 + $0x420] sm:$0xff]  }
  0xa6   :  { %5290 = vmatprep.subr.bf16.mxu0 %v5935_v36  ;;  %v6003_v36 = vld [vmem:[#allocation4 + $0x468] sm:$0xff]  }
  0xa7   :  { %5311 = vmatpush3.bf16.msra.mxu1 %v5934_v35  ;;  %v6002_v35 = vld [vmem:[#allocation4 + $0x4a0] sm:$0xff]  }
  0xa8   :  { %5312 = vmatprep.subr.bf16.mxu1 %v5937_v38  ;;  %v6005_v38 = vld [vmem:[#allocation4 + $0x4e8] sm:$0xff]  }
  0xa9   :  { %5291 = vmatpush3.bf16.msra.mxu0 %v5936_v37  ;;  %v6004_v37 = vld [vmem:[#allocation4 + $0x428] sm:$0xff]  }
  0xaa   :  { %5320 = vmatprep.subr.bf16.mxu0 %v5942_v42  ;;  %v6009_v42 = vld [vmem:[#allocation4 + $0x4f0] sm:$0xff]  }
  0xab   :  { %5313 = vmatpush3.bf16.msra.mxu1 %v5941_v41  ;;  %v6008_v41 = vld [vmem:[#allocation4 + $0x430] sm:$0xff]  }
  0xac   :  { %3776 = vmatmul.mubr.bf16.vlgmr.msra.gmra.mrb[8].mxu0 %v5938_v39  ;;  %5342 = vmatprep.subr.bf16.mxu1 %v5947_v46  ;;  %v6006_v39 = vld [vmem:[#allocation4 + $0x4a8] sm:$0xff]   ;;  %v6013_v46 = vld [vmem:[#allocation4 + $0x4f8] sm:$0xff]  }
  0xad   :  { %5321 = vmatpush3.bf16.msra.mxu0 %v5946_v45  ;;  %3857 = vmatprep.mubr.bf16.mxu0 %v5978_v12  ;;  %v6012_v45 = vld [vmem:[#allocation4 + $0x438] sm:$0xff]   ;;  %v6045_v12 = vld [vmem:[#allocation4 + $0x570] sm:$0xff]  }
  0xae   :  { %3817 = vmatmul.mubr.bf16.vlgmr.msra.gmra.mrb[8].mxu1 %v5943_v43  ;;  %5322 = vmatprep.subr.bf16.mxu0 %v5949_v48  ;;  %v6010_v43 = vld [vmem:[#allocation4 + $0x4b0] sm:$0xff]  }
  0xaf   :  { %5343 = vmatpush3.bf16.msra.mxu1 %v5948_v47  ;;  %3898 = vmatprep.mubr.bf16.mxu1 %v5983_v16  ;;  %v6014_v47 = vld [vmem:[#allocation2 + $0x40] ss:$200 sps:$4 sm:$0xff]   ;;  %v6016_v48 = vld [vmem:[#allocation2 + $0x44] ss:$200 sps:$4 sm:$0xff]  }
  0xb0   :  { %5344 = vmatprep.subr.bf16.mxu1 %v5951_v50  ;;  %v6018_v50 = vld [vmem:[#allocation4 + $0x540] sm:$0xff]   ;;  %v6049_v16 = vld [vmem:[#allocation4 + $0x578] sm:$0xff]  }
  0xb1   :  { %5323 = vmatpush3.bf16.msra.mxu0 %v5950_v49  ;;  %v6017_v49 = vld [vmem:[#allocation4 + $0x4b8] sm:$0xff]  }
  0xb2   :  { %5324 = vmatprep.subr.bf16.mxu0 %v5953_v52  ;;  %v6021_v52 = vld [vmem:[#allocation2 + $0x4c] ss:$200 sps:$4 sm:$0xff]  }
  0xb3   :  { %5345 = vmatpush3.bf16.msra.mxu1 %v5952_v51  ;;  %v6019_v51 = vld [vmem:[#allocation2 + $0x48] ss:$200 sps:$4 sm:$0xff]  }
  0xb4   :  { %5346 = vmatprep.subr.bf16.mxu1 %v5955_v54  ;;  %v6023_v54 = vld [vmem:[#allocation4 + $0x5c0] sm:$0xff]  }
  0xb5   :  { %5325 = vmatpush3.bf16.msra.mxu0 %v5954_v53  ;;  %v6022_v53 = vld [vmem:[#allocation4 + $0x500] sm:$0xff]  }
  0xb6   :  { %5326 = vmatprep.subr.bf16.mxu0 %v5957_v56  ;;  %v6025_v56 = vld [vmem:[#allocation4 + $0x548] sm:$0xff]  }
  0xb7   :  { %5347 = vmatpush3.bf16.msra.mxu1 %v5956_v55  ;;  %v6024_v55 = vld [vmem:[#allocation4 + $0x580] sm:$0xff]  }
  0xb8   :  { %5348 = vmatprep.subr.bf16.mxu1 %v5959_v58  ;;  %v6027_v58 = vld [vmem:[#allocation4 + $0x5c8] sm:$0xff]  }
  0xb9   :  { %5327 = vmatpush3.bf16.msra.mxu0 %v5958_v57  ;;  %v6026_v57 = vld [vmem:[#allocation4 + $0x508] sm:$0xff]  }
  0xba   :  { %5328 = vmatprep.subr.bf16.mxu0 %v5961_v60  ;;  %v6029_v60 = vld [vmem:[#allocation4 + $0x550] sm:$0xff]  }
  0xbb   :  { %5349 = vmatpush3.bf16.msra.mxu1 %v5960_v59  ;;  %v6028_v59 = vld [vmem:[#allocation4 + $0x588] sm:$0xff]  }
  0xbc   :  { %5350 = vmatprep.subr.bf16.mxu1 %v5963_v62  ;;  %v6031_v62 = vld [vmem:[#allocation4 + $0x5d0] sm:$0xff]  }
  0xbd   :  { %5329 = vmatpush3.bf16.msra.mxu0 %v5962_v61  ;;  %v6030_v61 = vld [vmem:[#allocation4 + $0x510] sm:$0xff]  }
  0xbe   :  { %5330 = vmatprep.subr.bf16.mxu0 %v5965_v0  ;;  %v6033_v0 = vld [vmem:[#allocation4 + $0x558] sm:$0xff]  }
  0xbf   :  { %5351 = vmatpush3.bf16.msra.mxu1 %v5964_v63  ;;  %v6032_v63 = vld [vmem:[#allocation4 + $0x590] sm:$0xff]  }
  0xc0   :  { %5352 = vmatprep.subr.bf16.mxu1 %v5967_v2  ;;  %v6035_v2 = vld [vmem:[#allocation4 + $0x5d8] sm:$0xff]  }
  0xc1   :  { %5331 = vmatpush3.bf16.msra.mxu0 %v5966_v1  ;;  %v6034_v1 = vld [vmem:[#allocation4 + $0x518] sm:$0xff]  }
  0xc2   :  { %5332 = vmatprep.subr.bf16.mxu0 %v5969_v4  ;;  %v6037_v4 = vld [vmem:[#allocation4 + $0x560] sm:$0xff]  }
  0xc3   :  { %5353 = vmatpush3.bf16.msra.mxu1 %v5968_v3  ;;  %v6036_v3 = vld [vmem:[#allocation4 + $0x598] sm:$0xff]  }
  0xc4   :  { %5354 = vmatprep.subr.bf16.mxu1 %v5971_v6  ;;  %v6039_v6 = vld [vmem:[#allocation4 + $0x5e0] sm:$0xff]  }
  0xc5   :  { %5333 = vmatpush3.bf16.msra.mxu0 %v5970_v5  ;;  %v6038_v5 = vld [vmem:[#allocation4 + $0x520] sm:$0xff]  }
  0xc6   :  { %5334 = vmatprep.subr.bf16.mxu0 %v5973_v8  ;;  %v6041_v8 = vld [vmem:[#allocation4 + $0x568] sm:$0xff]  }
  0xc7   :  { %5355 = vmatpush3.bf16.msra.mxu1 %v5972_v7  ;;  %v6040_v7 = vld [vmem:[#allocation4 + $0x5a0] sm:$0xff]  }
  0xc8   :  { %5356 = vmatprep.subr.bf16.mxu1 %v5975_v10  ;;  %v6043_v10 = vld [vmem:[#allocation4 + $0x5e8] sm:$0xff]  }
  0xc9   :  { %5335 = vmatpush3.bf16.msra.mxu0 %v5974_v9  ;;  %v6042_v9 = vld [vmem:[#allocation4 + $0x528] sm:$0xff]  }
  0xca   :  { %5364 = vmatprep.subr.bf16.mxu0 %v5980_v14  ;;  %v6047_v14 = vld [vmem:[#allocation4 + $0x5f0] sm:$0xff]  }
  0xcb   :  { %5357 = vmatpush3.bf16.msra.mxu1 %v5979_v13  ;;  %v6046_v13 = vld [vmem:[#allocation4 + $0x530] sm:$0xff]  }
  0xcc   :  { %3858 = vmatmul.mubr.bf16.vlgmr.msra.gmra.mrb[12].mxu0 %v5976_v11  ;;  %5386 = vmatprep.subr.bf16.mxu1 %v5985_v18  ;;  %v6044_v11 = vld [vmem:[#allocation4 + $0x5a8] sm:$0xff]   ;;  %v6051_v18 = vld [vmem:[#allocation4 + $0x5f8] sm:$0xff]  }
  0xcd   :  { %5365 = vmatpush3.bf16.msra.mxu0 %v5984_v17  ;;  %3939 = vmatprep.mubr.bf16.mxu0 %v6016_v48  ;;  %v6050_v17 = vld [vmem:[#allocation4 + $0x538] sm:$0xff]   ;;  %v6083_v48 = vld [vmem:[#allocation4 + $0x670] sm:$0xff]  }
  0xce   :  { %3899 = vmatmul.mubr.bf16.vlgmr.msra.gmra.mrb[12].mxu1 %v5981_v15  ;;  %5366 = vmatprep.subr.bf16.mxu0 %v5987_v20  ;;  %v6048_v15 = vld [vmem:[#allocation4 + $0x5b0] sm:$0xff]   ;;  %v6054_v20 = vld [vmem:[#allocation2 + $0x54] ss:$200 sps:$4 sm:$0xff]  }
  0xcf   :  { %5387 = vmatpush3.bf16.msra.mxu1 %v5986_v19  ;;  %3980 = vmatprep.mubr.bf16.mxu1 %v6021_v52  ;;  %v6052_v19 = vld [vmem:[#allocation2 + $0x50] ss:$200 sps:$4 sm:$0xff]   ;;  %v6087_v52 = vld [vmem:[#allocation4 + $0x678] sm:$0xff]  }
  0xd0   :  { %5388 = vmatprep.subr.bf16.mxu1 %v5989_v22  ;;  %v6056_v22 = vld [vmem:[#allocation4 + $0x640] sm:$0xff]  }
  0xd1   :  { %5367 = vmatpush3.bf16.msra.mxu0 %v5988_v21  ;;  %v6055_v21 = vld [vmem:[#allocation4 + $0x5b8] sm:$0xff]  }
  0xd2   :  { %5368 = vmatprep.subr.bf16.mxu0 %v5991_v24  ;;  %v6059_v24 = vld [vmem:[#allocation2 + $0x5c] ss:$200 sps:$4 sm:$0xff]  }
  0xd3   :  { %5389 = vmatpush3.bf16.msra.mxu1 %v5990_v23  ;;  %v6057_v23 = vld [vmem:[#allocation2 + $0x58] ss:$200 sps:$4 sm:$0xff]  }
  0xd4   :  { %5390 = vmatprep.subr.bf16.mxu1 %v5993_v26  ;;  %v6061_v26 = vld [vmem:[#allocation4 + $0x6c0] sm:$0xff]  }
  0xd5   :  { %5369 = vmatpush3.bf16.msra.mxu0 %v5992_v25  ;;  %v6060_v25 = vld [vmem:[#allocation4 + $0x600] sm:$0xff]  }
  0xd6   :  { %5370 = vmatprep.subr.bf16.mxu0 %v5995_v28  ;;  %v6063_v28 = vld [vmem:[#allocation4 + $0x648] sm:$0xff]  }
  0xd7   :  { %5391 = vmatpush3.bf16.msra.mxu1 %v5994_v27  ;;  %v6062_v27 = vld [vmem:[#allocation4 + $0x680] sm:$0xff]  }
  0xd8   :  { %5392 = vmatprep.subr.bf16.mxu1 %v5997_v30  ;;  %v6065_v30 = vld [vmem:[#allocation4 + $0x6c8] sm:$0xff]  }
  0xd9   :  { %5371 = vmatpush3.bf16.msra.mxu0 %v5996_v29  ;;  %v6064_v29 = vld [vmem:[#allocation4 + $0x608] sm:$0xff]  }
  0xda   :  { %5372 = vmatprep.subr.bf16.mxu0 %v5999_v32  ;;  %v6067_v32 = vld [vmem:[#allocation4 + $0x650] sm:$0xff]  }
  0xdb   :  { %5393 = vmatpush3.bf16.msra.mxu1 %v5998_v31  ;;  %v6066_v31 = vld [vmem:[#allocation4 + $0x688] sm:$0xff]  }
  0xdc   :  { %5394 = vmatprep.subr.bf16.mxu1 %v6001_v34  ;;  %v6069_v34 = vld [vmem:[#allocation4 + $0x6d0] sm:$0xff]  }
  0xdd   :  { %5373 = vmatpush3.bf16.msra.mxu0 %v6000_v33  ;;  %v6068_v33 = vld [vmem:[#allocation4 + $0x610] sm:$0xff]  }
  0xde   :  { %5374 = vmatprep.subr.bf16.mxu0 %v6003_v36  ;;  %v6071_v36 = vld [vmem:[#allocation4 + $0x658] sm:$0xff]  }
  0xdf   :  { %5395 = vmatpush3.bf16.msra.mxu1 %v6002_v35  ;;  %v6070_v35 = vld [vmem:[#allocation4 + $0x690] sm:$0xff]  }
  0xe0   :  { %5396 = vmatprep.subr.bf16.mxu1 %v6005_v38  ;;  %v6073_v38 = vld [vmem:[#allocation4 + $0x6d8] sm:$0xff]  }
  0xe1   :  { %5375 = vmatpush3.bf16.msra.mxu0 %v6004_v37  ;;  %v6072_v37 = vld [vmem:[#allocation4 + $0x618] sm:$0xff]  }
  0xe2   :  { %5376 = vmatprep.subr.bf16.mxu0 %v6007_v40  ;;  %v6075_v40 = vld [vmem:[#allocation4 + $0x660] sm:$0xff]  }
  0xe3   :  { %5397 = vmatpush3.bf16.msra.mxu1 %v6006_v39  ;;  %v6074_v39 = vld [vmem:[#allocation4 + $0x698] sm:$0xff]  }
  0xe4   :  { %5398 = vmatprep.subr.bf16.mxu1 %v6009_v42  ;;  %v6077_v42 = vld [vmem:[#allocation4 + $0x6e0] sm:$0xff]  }
  0xe5   :  { %5377 = vmatpush3.bf16.msra.mxu0 %v6008_v41  ;;  %v6076_v41 = vld [vmem:[#allocation4 + $0x620] sm:$0xff]  }
  0xe6   :  { %5378 = vmatprep.subr.bf16.mxu0 %v6011_v44  ;;  %v6079_v44 = vld [vmem:[#allocation4 + $0x668] sm:$0xff]  }
  0xe7   :  { %5399 = vmatpush3.bf16.msra.mxu1 %v6010_v43  ;;  %v6078_v43 = vld [vmem:[#allocation4 + $0x6a0] sm:$0xff]  }
  0xe8   :  { %5400 = vmatprep.subr.bf16.mxu1 %v6013_v46  ;;  %v6081_v46 = vld [vmem:[#allocation4 + $0x6e8] sm:$0xff]  }
  0xe9   :  { %5379 = vmatpush3.bf16.msra.mxu0 %v6012_v45  ;;  %v6080_v45 = vld [vmem:[#allocation4 + $0x628] sm:$0xff]  }
  0xea   :  { %5408 = vmatprep.subr.bf16.mxu0 %v6018_v50  ;;  %v6085_v50 = vld [vmem:[#allocation4 + $0x6f0] sm:$0xff]  }
  0xeb   :  { %5401 = vmatpush3.bf16.msra.mxu1 %v6017_v49  ;;  %v6084_v49 = vld [vmem:[#allocation4 + $0x630] sm:$0xff]  }
  0xec   :  { %3940 = vmatmul.mubr.bf16.vlgmr.msra.gmra.mrb[16].mxu0 %v6014_v47  ;;  %5430 = vmatprep.subr.bf16.mxu1 %v6023_v54  ;;  %v6082_v47 = vld [vmem:[#allocation4 + $0x6a8] sm:$0xff]   ;;  %v6089_v54 = vld [vmem:[#allocation4 + $0x6f8] sm:$0xff]  }
  0xed   :  { %5409 = vmatpush3.bf16.msra.mxu0 %v6022_v53  ;;  %4021 = vmatprep.mubr.bf16.mxu0 %v6054_v20  ;;  %v6088_v53 = vld [vmem:[#allocation4 + $0x638] sm:$0xff]  }
  0xee   :  { %3981 = vmatmul.mubr.bf16.vlgmr.msra.gmra.mrb[16].mxu1 %v6019_v51  ;;  %5410 = vmatprep.subr.bf16.mxu0 %v6025_v56  ;;  %v6086_v51 = vld [vmem:[#allocation4 + $0x6b0] sm:$0xff]   ;;  %v6109_v20 = vld [vmem:[#allocation4 + $0x758] sm:$0xff]  }
  0xef   :  { %5431 = vmatpush3.bf16.msra.mxu1 %v6024_v55  ;;  %4062 = vmatprep.mubr.bf16.mxu1 %v6059_v24  ;;  %v6090_v55 = vld [vmem:[#allocation2 + $0x60] ss:$200 sps:$4 sm:$0xff]   ;;  %v6092_v56 = vld [vmem:[#allocation2 + $0x64] ss:$200 sps:$4 sm:$0xff]   ;;  %v6113_v24 = vld [vmem:[#allocation4 + $0x760] sm:$0xff]  }
  0xf0   :  { %5432 = vmatprep.subr.bf16.mxu1 %v6027_v58  ;;  %v6094_v58 = vld [vmem:[#allocation4 + $0x740] sm:$0xff]  }
  0xf1   :  { %5411 = vmatpush3.bf16.msra.mxu0 %v6026_v57  ;;  %v6093_v57 = vld [vmem:[#allocation4 + $0x6b8] sm:$0xff]  }
  0xf2   :  { %5412 = vmatprep.subr.bf16.mxu0 %v6029_v60  ;;  %v6097_v60 = vld [vmem:[#allocation2 + $0x6c] ss:$200 sps:$4 sm:$0xff]  }
  0xf3   :  { %5433 = vmatpush3.bf16.msra.mxu1 %v6028_v59  ;;  %v6095_v59 = vld [vmem:[#allocation2 + $0x68] ss:$200 sps:$4 sm:$0xff]  }
  0xf4   :  { %5434 = vmatprep.subr.bf16.mxu1 %v6031_v62  ;;  %v6099_v62 = vld [vmem:[#allocation4 + $0x7c0] sm:$0xff]  }
  0xf5   :  { %5413 = vmatpush3.bf16.msra.mxu0 %v6030_v61  ;;  %v6098_v61 = vld [vmem:[#allocation4 + $0x700] sm:$0xff]  }
  0xf6   :  { %5414 = vmatprep.subr.bf16.mxu0 %v6033_v0 }
  0xf7   :  { %5435 = vmatpush3.bf16.msra.mxu1 %v6032_v63  ;;  %v6100_v63 = vld [vmem:[#allocation4 + $0x780] sm:$0xff]  }
  0xf8   :  { %5436 = vmatprep.subr.bf16.mxu1 %v6035_v2 }
  0xf9   :  { %5415 = vmatpush3.bf16.msra.mxu0 %v6034_v1  ;;  %v6101_v1 = vld [vmem:[#allocation4 + $0x748] sm:$0xff]  }
  0xfa   :  { %5416 = vmatprep.subr.bf16.mxu0 %v6037_v4 }
  0xfb   :  { %5437 = vmatpush3.bf16.msra.mxu1 %v6036_v3  ;;  %v6102_v3 = vld [vmem:[#allocation4 + $0x708] sm:$0xff]  }
  0xfc   :  { %5438 = vmatprep.subr.bf16.mxu1 %v6039_v6  ;;  %v6103_v6 = vld [vmem:[#allocation4 + $0x7c8] sm:$0xff]  }
  0xfd   :  { %5417 = vmatpush3.bf16.msra.mxu0 %v6038_v5 }
  0xfe   :  { %5418 = vmatprep.subr.bf16.mxu0 %v6041_v8  ;;  %v6104_v8 = vld [vmem:[#allocation4 + $0x788] sm:$0xff]  }
  0xff   :  { %5439 = vmatpush3.bf16.msra.mxu1 %v6040_v7 }
 0x100   :  { %5440 = vmatprep.subr.bf16.mxu1 %v6043_v10  ;;  %v6105_v10 = vld [vmem:[#allocation4 + $0x750] sm:$0xff]  }
 0x101   :  { %5419 = vmatpush3.bf16.msra.mxu0 %v6042_v9 }
 0x102   :  { %5420 = vmatprep.subr.bf16.mxu0 %v6045_v12 }
 0x103   :  { %5441 = vmatpush3.bf16.msra.mxu1 %v6044_v11 }
 0x104   :  { %5442 = vmatprep.subr.bf16.mxu1 %v6047_v14 }
 0x105   :  { %5421 = vmatpush3.bf16.msra.mxu0 %v6046_v13  ;;  %v6106_v13 = vld [vmem:[#allocation4 + $0x710] sm:$0xff]  }
 0x106   :  { %5422 = vmatprep.subr.bf16.mxu0 %v6049_v16  ;;  %v6107_v16 = vld [vmem:[#allocation4 + $0x7d0] sm:$0xff]  }
 0x107   :  { %5443 = vmatpush3.bf16.msra.mxu1 %v6048_v15 }
 0x108   :  { %5444 = vmatprep.subr.bf16.mxu1 %v6051_v18  ;;  %v6108_v18 = vld [vmem:[#allocation4 + $0x790] sm:$0xff]  }
 0x109   :  { %5423 = vmatpush3.bf16.msra.mxu0 %v6050_v17 }
 0x10a   :  { %5452 = vmatprep.subr.bf16.mxu0 %v6056_v22  ;;  %v6111_v22 = vld [vmem:[#allocation4 + $0x7d8] sm:$0xff]  }
 0x10b   :  { %5445 = vmatpush3.bf16.msra.mxu1 %v6055_v21  ;;  %v6110_v21 = vld [vmem:[#allocation4 + $0x718] sm:$0xff]  }
 0x10c   :  { %4022 = vmatmul.mubr.bf16.vlgmr.msra.gmra.mrb[20].mxu0 %v6052_v19  ;;  %5474 = vmatprep.subr.bf16.mxu1 %v6061_v26  ;;  %v6115_v26 = vld [vmem:[#allocation4 + $0x7e0] sm:$0xff]  }
 0x10d   :  { %5453 = vmatpush3.bf16.msra.mxu0 %v6060_v25  ;;  %4103 = vmatprep.mubr.bf16.mxu0 %v6092_v56  ;;  %v6114_v25 = vld [vmem:[#allocation4 + $0x720] sm:$0xff]  }
 0x10e   :  { %4063 = vmatmul.mubr.bf16.vlgmr.msra.gmra.mrb[20].mxu1 %v6057_v23  ;;  %5454 = vmatprep.subr.bf16.mxu0 %v6063_v28  ;;  %v6112_v23 = vld [vmem:[#allocation4 + $0x798] sm:$0xff]   ;;  %v4736_v28 = vld [vmem:[#allocation6] ss:$0 sm:$0xff] }
 0x10f   :  { %5475 = vmatpush3.bf16.msra.mxu1 %v6062_v27  ;;  %4144 = vmatprep.mubr.bf16.mxu1 %v6097_v60  ;;  %v6116_v27 = vld [vmem:[#allocation4 + $0x7a0] sm:$0xff]   ;;  %v6141_v60 = vld [vmem:[#allocation4 + $0x8c8] sm:$0xff]  }
 0x110   :  { %5476 = vmatprep.subr.bf16.mxu1 %v6065_v30  ;;  %v6117_v30 = vld [vmem:[#allocation4 + $0x768] sm:$0xff]  }
 0x111   :  { %5455 = vmatpush3.bf16.msra.mxu0 %v6064_v29 }
 0x112   :  { %5456 = vmatprep.subr.bf16.mxu0 %v6067_v32  ;;  %v6118_v32 = vld [vmem:[#allocation4 + $0x728] sm:$0xff]  }
 0x113   :  { %5477 = vmatpush3.bf16.msra.mxu1 %v6066_v31 }
 0x114   :  { %5478 = vmatprep.subr.bf16.mxu1 %v6069_v34  ;;  %v6119_v34 = vld [vmem:[#allocation4 + $0x7e8] sm:$0xff]  }
 0x115   :  { %5457 = vmatpush3.bf16.msra.mxu0 %v6068_v33 }
 0x116   :  { %5458 = vmatprep.subr.bf16.mxu0 %v6071_v36  ;;  %v6120_v36 = vld [vmem:[#allocation4 + $0x7a8] sm:$0xff]  }
 0x117   :  { %5479 = vmatpush3.bf16.msra.mxu1 %v6070_v35 }
 0x118   :  { %5480 = vmatprep.subr.bf16.mxu1 %v6073_v38  ;;  %v6122_v38 = vld [vmem:[#allocation4 + $0x730] sm:$0xff]  }
 0x119   :  { %5459 = vmatpush3.bf16.msra.mxu0 %v6072_v37  ;;  %v6121_v37 = vld [vmem:[#allocation4 + $0x770] sm:$0xff]  }
 0x11a   :  { %5460 = vmatprep.subr.bf16.mxu0 %v6075_v40  ;;  %v6124_v40 = vld [vmem:[#allocation4 + $0x7b0] sm:$0xff]  }
 0x11b   :  { %5481 = vmatpush3.bf16.msra.mxu1 %v6074_v39  ;;  %v6123_v39 = vld [vmem:[#allocation4 + $0x7f0] sm:$0xff]  }
 0x11c   :  { %5482 = vmatprep.subr.bf16.mxu1 %v6077_v42  ;;  %v6126_v42 = vld [vmem:[#allocation4 + $0x738] sm:$0xff]  }
 0x11d   :  { %5461 = vmatpush3.bf16.msra.mxu0 %v6076_v41  ;;  %v6125_v41 = vld [vmem:[#allocation4 + $0x778] sm:$0xff]  }
 0x11e   :  { %5462 = vmatprep.subr.bf16.mxu0 %v6079_v44  ;;  %v6128_v44 = vld [vmem:[#allocation2 + $0x70] ss:$200 sps:$4 sm:$0xff]  }
 0x11f   :  { %5483 = vmatpush3.bf16.msra.mxu1 %v6078_v43  ;;  %v6127_v43 = vld [vmem:[#allocation4 + $0x7f8] sm:$0xff]  }
 0x120   :  { %5484 = vmatprep.subr.bf16.mxu1 %v6081_v46  ;;  %v6131_v46 = vld [vmem:[#allocation4 + $0x7b8] sm:$0xff]  }
 0x121   :  { %5463 = vmatpush3.bf16.msra.mxu0 %v6080_v45  ;;  %v6130_v45 = vld [vmem:[#allocation2 + $0x74] ss:$200 sps:$4 sm:$0xff]  }
 0x122   :  { %5464 = vmatprep.subr.bf16.mxu0 %v6083_v48  ;;  %v6133_v48 = vld [vmem:[#allocation2 + $0x78] ss:$200 sps:$4 sm:$0xff]  }
 0x123   :  { %5485 = vmatpush3.bf16.msra.mxu1 %v6082_v47  ;;  %v6132_v47 = vld [vmem:[#allocation4 + $0x840] sm:$0xff]  }
 0x124   :  { %5486 = vmatprep.subr.bf16.mxu1 %v6085_v50  ;;  %v6136_v50 = vld [vmem:[#allocation4 + $0x800] sm:$0xff]  }
 0x125   :  { %5465 = vmatpush3.bf16.msra.mxu0 %v6084_v49  ;;  %v6135_v49 = vld [vmem:[#allocation2 + $0x7c] ss:$200 sps:$4 sm:$0xff]  }
 0x126   :  { %5466 = vmatprep.subr.bf16.mxu0 %v6087_v52 }
 0x127   :  { %5487 = vmatpush3.bf16.msra.mxu1 %v6086_v51  ;;  %v6137_v51 = vld [vmem:[#allocation4 + $0x8c0] sm:$0xff]  }
 0x128   :  { %5488 = vmatprep.subr.bf16.mxu1 %v6089_v54 }
 0x129   :  { %5467 = vmatpush3.bf16.msra.mxu0 %v6088_v53  ;;  %v6138_v53 = vld [vmem:[#allocation4 + $0x880] sm:$0xff]  }
 0x12a   :  { %5496 = vmatprep.subr.bf16.mxu0 %v6094_v58  ;;  %v6140_v58 = vld [vmem:[#allocation4 + $0x808] sm:$0xff]  }
 0x12b   :  { %5489 = vmatpush3.bf16.msra.mxu1 %v6093_v57 }
 0x12c   :  { %4104 = vmatmul.mubr.bf16.vlgmr.msra.gmra.mrb[24].mxu0 %v6090_v55  ;;  %5518 = vmatprep.subr.bf16.mxu1 %v6099_v62  ;;  %v6139_v55 = vld [vmem:[#allocation4 + $0x848] sm:$0xff]  }
 0x12d   :  { %5497 = vmatpush3.bf16.msra.mxu0 %v6098_v61  ;;  %4185 = vmatprep.mubr.bf16.mxu0 %v6130_v45 }
 0x12e   :  { %4145 = vmatmul.mubr.bf16.vlgmr.msra.gmra.mrb[24].mxu1 %v6095_v59  ;;  %5498 = vmatprep.subr.bf16.mxu0 %v6101_v1 }
 0x12f   :  { %5519 = vmatpush3.bf16.msra.mxu1 %v6100_v63  ;;  %4226 = vmatprep.mubr.bf16.mxu1 %v6135_v49 }
 0x130   :  { %5520 = vmatprep.subr.bf16.mxu1 %v6103_v6  ;;  %v6144_v6 = vld [vmem:[#allocation4 + $0x810] sm:$0xff]  }
 0x131   :  { %5499 = vmatpush3.bf16.msra.mxu0 %v6102_v3 }
 0x132   :  { %5500 = vmatprep.subr.bf16.mxu0 %v6105_v10 }
 0x133   :  { %5521 = vmatpush3.bf16.msra.mxu1 %v6104_v8  ;;  %v6145_v8 = vld [vmem:[#allocation4 + $0x8d0] sm:$0xff]  }
 0x134   :  { %5522 = vmatprep.subr.bf16.mxu1 %v6107_v16  ;;  %v6150_v16 = vld [vmem:[#allocation4 + $0x898] sm:$0xff]  }
 0x135   :  { %5501 = vmatpush3.bf16.msra.mxu0 %v6106_v13 }
 0x136   :  { %5502 = vmatprep.subr.bf16.mxu0 %v6109_v20  ;;  %v6154_v20 = vld [vmem:[#allocation4 + $0x8a0] sm:$0xff]  }
 0x137   :  { %5523 = vmatpush3.bf16.msra.mxu1 %v6108_v18  ;;  %v6152_v18 = vld [vmem:[#allocation4 + $0x820] sm:$0xff]  }
 0x138   :  { %5524 = vmatprep.subr.bf16.mxu1 %v6111_v22  ;;  %v6156_v22 = vld [vmem:[#allocation4 + $0x828] sm:$0xff]  }
 0x139   :  { %5503 = vmatpush3.bf16.msra.mxu0 %v6110_v21  ;;  %v6155_v21 = vld [vmem:[#allocation4 + $0x868] sm:$0xff]  }
 0x13a   :  { %5504 = vmatprep.subr.bf16.mxu0 %v6113_v24  ;;  %v6158_v24 = vld [vmem:[#allocation4 + $0x8a8] sm:$0xff]  }
 0x13b   :  { %5525 = vmatpush3.bf16.msra.mxu1 %v6112_v23  ;;  %v6157_v23 = vld [vmem:[#allocation4 + $0x8e8] sm:$0xff]  }
 0x13c   :  { %5526 = vmatprep.subr.bf16.mxu1 %v6115_v26  ;;  %v6160_v26 = vld [vmem:[#allocation4 + $0x830] sm:$0xff]  }
 0x13d   :  { %5505 = vmatpush3.bf16.msra.mxu0 %v6114_v25  ;;  %v6159_v25 = vld [vmem:[#allocation4 + $0x870] sm:$0xff]  }
 0x13e   :  { %5506 = vmatprep.subr.bf16.mxu0 %v6117_v30  ;;  %v6164_v30 = vld [vmem:[#allocation4 + $0x838] sm:$0xff]  }
 0x13f   :  { %v5204_v0 = vpop.f32.mrb[0].mxu0  ;;  %5527 = vmatpush3.bf16.msra.mxu1 %v6116_v27  ;;  %v6161_v27 = vld [vmem:[#allocation4 + $0x8f0] sm:$0xff]  }
 0x140   :  { %v5205_v2 = vpop.f32.mrb[1].mxu0  ;;  %5528 = vmatprep.subr.bf16.mxu1 %v6119_v34  ;;  %v6169_v34 = vld [vmem:[#allocation4 + $0x8b8] sm:$0xff]  }
 0x141   :  { %v5206_v4 = vadd.f32 %v5205_v2, %v5204_v0  ;;  %v5207_v5 = vpop.f32.mrb[2].mxu0  ;;  %v5226_v7 = vpop.f32.mrb[0].mxu1  ;;  %5507 = vmatpush3.bf16.msra.mxu0 %v6118_v32  ;;  %v6142_v0 = vld [vmem:[#allocation4 + $0x888] sm:$0xff]   ;;  %v6143_v2 = vld [vmem:[#allocation4 + $0x850] sm:$0xff]  }
 0x142   :  { %v5208_v9 = vpop.f32.mrb[3].mxu0  ;;  %v5227_v12 = vpop.f32.mrb[1].mxu1  ;;  %5508 = vmatprep.subr.bf16.mxu0 %v6121_v37  ;;  %v6166_v32 = vld [vmem:[#allocation2 + $0x80] ss:$200 sps:$4 sm:$0xff]   ;;  %v6173_v37 = vld [vmem:[#allocation2 + $0x8c] ss:$200 sps:$4 sm:$0xff]  }
 0x143   :  { %v5209_v11 = vadd.f32 %v5208_v9, %v5207_v5  ;;  %v5228_v14 = vadd.f32 %v5227_v12, %v5226_v7  ;;  %v5229_v15 = vpop.f32.mrb[2].mxu1  ;;  %v3614_v29 = vadd.f32 %v5206_v4, %v4736_v28  ;;  %5529 = vmatpush3.bf16.msra.mxu1 %v6120_v36  ;;  %v6147_v12 = vld [vmem:[#allocation4 + $0x858] sm:$0xff]  }
 0x144   :  { %v5230_v17 = vpop.f32.mrb[3].mxu1  ;;  %5530 = vmatprep.subr.bf16.mxu1 %v6123_v39  ;;  %v6171_v36 = vld [vmem:[#allocation2 + $0x88] ss:$200 sps:$4 sm:$0xff]  }
 0x145   :  { %v5231_v19 = vadd.f32 %v5230_v17, %v5229_v15  ;;  %v3617_v31 = vadd.f32 %v5209_v11, %v4736_v28  ;;  %v3655_v33 = vadd.f32 %v5228_v14, %v3614_v29  ;;  %5509 = vmatpush3.bf16.msra.mxu0 %v6122_v38  ;;  %v6146_v11 = vld [vmem:[#allocation4 + $0x890] sm:$0xff]   ;;  %v6148_v14 = vld [vmem:[#allocation4 + $0x818] sm:$0xff]   ;;  %v6151_v17 = vld [vmem:[#allocation4 + $0x860] sm:$0xff]  }
 0x146   :  { %5510 = vmatprep.subr.bf16.mxu0 %v6125_v41  ;;  %v6149_v15 = vld [vmem:[#allocation4 + $0x8d8] sm:$0xff]   ;;  %v6162_v28 = vld [vmem:[#allocation4 + $0x8b0] sm:$0xff]   ;;  %v6174_v38 = vld [vmem:[#allocation4 + $0x900] sm:$0xff]  }
 0x147   :  { %v3658_v35 = vadd.f32 %v5231_v19, %v3617_v31  ;;  %5531 = vmatpush3.bf16.msra.mxu1 %v6124_v40  ;;  %v6153_v19 = vld [vmem:[#allocation4 + $0x8e0] sm:$0xff]   ;;  %v6163_v29 = vld [vmem:[#allocation4 + $0x878] sm:$0xff]  }
 0x148   :  { %5532 = vmatprep.subr.bf16.mxu1 %v6127_v43  ;;  %v6165_v31 = vld [vmem:[#allocation4 + $0x8f8] sm:$0xff]   ;;  %v6175_v39 = vld [vmem:[#allocation4 + $0x9c0] sm:$0xff]   ;;  %v6177_v43 = vld [vmem:[#allocation4 + $0x948] sm:$0xff]  }
 0x149   :  { %5511 = vmatpush3.bf16.msra.mxu0 %v6126_v42  ;;  %v6176_v41 = vld [vmem:[#allocation4 + $0x980] sm:$0xff]  }
 0x14a   :  { %5540 = vmatprep.subr.bf16.mxu0 %v6132_v47 }
 0x14b   :  { %5533 = vmatpush3.bf16.msra.mxu1 %v6131_v46  ;;  %v6178_v46 = vld [vmem:[#allocation4 + $0x908] sm:$0xff]  }
 0x14c   :  { %4186 = vmatmul.mubr.bf16.vlgmr.msra.gmra.mrb[28].mxu0 %v6128_v44  ;;  %5562 = vmatprep.subr.bf16.mxu1 %v6137_v51  ;;  %v6180_v51 = vld [vmem:[#allocation4 + $0x988] sm:$0xff]  }
 0x14d   :  { %5541 = vmatpush3.bf16.msra.mxu0 %v6136_v50 }
 0x14e   :  { %4227 = vmatmul.mubr.bf16.vlgmr.msra.gmra.mrb[28].mxu1 %v6133_v48  ;;  %5542 = vmatprep.subr.bf16.mxu0 %v6139_v55  ;;  %v6179_v48 = vld [vmem:[#allocation4 + $0x9c8] sm:$0xff]  }
 0x14f   :  { %5563 = vmatpush3.bf16.msra.mxu1 %v6138_v53  ;;  %4308 = vmatprep.mubr.bf16.mxu1 %v6173_v37  ;;  %v6218_v37 = vld [vmem:[#allocation4 + $0xa88] sm:$0xff]  }
 0x150   :  { %5564 = vmatprep.subr.bf16.mxu1 %v6141_v60  ;;  %v6183_v60 = vld [vmem:[#allocation4 + $0x9d0] sm:$0xff]  }
 0x151   :  { %5543 = vmatpush3.bf16.msra.mxu0 %v6140_v58 }
 0x152   :  { %5544 = vmatprep.subr.bf16.mxu0 %v6143_v2  ;;  %v6186_v2 = vld [vmem:[#allocation4 + $0x918] sm:$0xff]  }
 0x153   :  { %5565 = vmatpush3.bf16.msra.mxu1 %v6142_v0  ;;  %v6185_v0 = vld [vmem:[#allocation4 + $0x958] sm:$0xff]  }
 0x154   :  { %5566 = vmatprep.subr.bf16.mxu1 %v6145_v8  ;;  %v6192_v8 = vld [vmem:[#allocation4 + $0x9a0] sm:$0xff]  }
 0x155   :  { %5545 = vmatpush3.bf16.msra.mxu0 %v6144_v6  ;;  %v6190_v6 = vld [vmem:[#allocation4 + $0x920] sm:$0xff]  }
 0x156   :  { %5546 = vmatprep.subr.bf16.mxu0 %v6147_v12  ;;  %v6196_v12 = vld [vmem:[#allocation4 + $0x9a8] sm:$0xff]  }
 0x157   :  { %5567 = vmatpush3.bf16.msra.mxu1 %v6146_v11  ;;  %v6195_v11 = vld [vmem:[#allocation4 + $0x9e8] sm:$0xff]  }
 0x158   :  { %5568 = vmatprep.subr.bf16.mxu1 %v6149_v15  ;;  %v6199_v15 = vld [vmem:[#allocation4 + $0x9f0] sm:$0xff]  }
 0x159   :  { %5547 = vmatpush3.bf16.msra.mxu0 %v6148_v14  ;;  %v6198_v14 = vld [vmem:[#allocation4 + $0x930] sm:$0xff]  }
 0x15a   :  { %5548 = vmatprep.subr.bf16.mxu0 %v6151_v17  ;;  %v6201_v17 = vld [vmem:[#allocation4 + $0x978] sm:$0xff]  }
 0x15b   :  { %5569 = vmatpush3.bf16.msra.mxu1 %v6150_v16  ;;  %v6200_v16 = vld [vmem:[#allocation4 + $0x9b0] sm:$0xff]  }
 0x15c   :  { %5570 = vmatprep.subr.bf16.mxu1 %v6153_v19  ;;  %v6203_v19 = vld [vmem:[#allocation4 + $0x9f8] sm:$0xff]  }
 0x15d   :  { %5549 = vmatpush3.bf16.msra.mxu0 %v6152_v18  ;;  %v6202_v18 = vld [vmem:[#allocation4 + $0x938] sm:$0xff]  }
 0x15e   :  { %5550 = vmatprep.subr.bf16.mxu0 %v6155_v21  ;;  %v6206_v21 = vld [vmem:[#allocation2 + $0x94] ss:$200 sps:$4 sm:$0xff]  }
 0x15f   :  { %v5248_v52 = vpop.f32.mrb[4].mxu0  ;;  %5571 = vmatpush3.bf16.msra.mxu1 %v6154_v20  ;;  %v6204_v20 = vld [vmem:[#allocation2 + $0x90] ss:$200 sps:$4 sm:$0xff]  }
 0x160   :  { %v5249_v54 = vpop.f32.mrb[5].mxu0  ;;  %5572 = vmatprep.subr.bf16.mxu1 %v6157_v23  ;;  %v6208_v23 = vld [vmem:[#allocation4 + $0xa40] sm:$0xff]  }
 0x161   :  { %v5250_v56 = vadd.f32 %v5249_v54, %v5248_v52  ;;  %v5251_v57 = vpop.f32.mrb[6].mxu0  ;;  %v5270_v62 = vpop.f32.mrb[4].mxu1  ;;  %5551 = vmatpush3.bf16.msra.mxu0 %v6156_v22  ;;  %v6181_v54 = vld [vmem:[#allocation4 + $0x950] sm:$0xff]   ;;  %v6207_v22 = vld [vmem:[#allocation4 + $0x9b8] sm:$0xff]  }
 0x162   :  { %v5252_v59 = vpop.f32.mrb[7].mxu0  ;;  %v5271_v1 = vpop.f32.mrb[5].mxu1  ;;  %5552 = vmatprep.subr.bf16.mxu0 %v6159_v25  ;;  %v6211_v25 = vld [vmem:[#allocation2 + $0x9c] ss:$200 sps:$4 sm:$0xff]  }
 0x163   :  { %v3696_v61 = vadd.f32 %v5250_v56, %v3655_v33  ;;  %v5253_v63 = vadd.f32 %v5252_v59, %v5251_v57  ;;  %v5272_v4 = vadd.f32 %v5271_v1, %v5270_v62  ;;  %v5273_v5 = vpop.f32.mrb[6].mxu1  ;;  %5573 = vmatpush3.bf16.msra.mxu1 %v6158_v24  ;;  %v6168_v33 = vld [vmem:[#allocation2 + $0x84] ss:$200 sps:$4 sm:$0xff]   ;;  %v6209_v24 = vld [vmem:[#allocation2 + $0x98] ss:$200 sps:$4 sm:$0xff]  }
 0x164   :  { %v5274_v7 = vpop.f32.mrb[7].mxu1  ;;  %5574 = vmatprep.subr.bf16.mxu1 %v6161_v27  ;;  %4267 = vmatprep.mubr.bf16.mxu0 %v6168_v33  ;;  %v6182_v57 = vld [vmem:[#allocation4 + $0x910] sm:$0xff]   ;;  %v6213_v27 = vld [vmem:[#allocation4 + $0xac0] sm:$0xff]  }
 0x165   :  { %v3699_v3 = vadd.f32 %v5253_v63, %v3658_v35  ;;  %v6494_v9 = vadd.f32 %v5272_v4, %v3696_v61  ;;  %v5275_v10 = vadd.f32 %v5274_v7, %v5273_v5  ;;  %5553 = vmatpush3.bf16.msra.mxu0 %v6160_v26  ;;  %v6170_v35 = vld [vmem:[#allocation4 + $0x940] sm:$0xff]   ;;  %v6184_v63 = vld [vmem:[#allocation4 + $0x990] sm:$0xff]   ;;  %v6188_v4 = vld [vmem:[#allocation4 + $0x998] sm:$0xff]  }
 0x166   :  { %5554 = vmatprep.subr.bf16.mxu0 %v6163_v29  ;;  %v6189_v5 = vld [vmem:[#allocation4 + $0x960] sm:$0xff]  }
 0x167   :  { %v6496_v13 = vadd.f32 %v5275_v10, %v3699_v3  ;;  %5575 = vmatpush3.bf16.msra.mxu1 %v6162_v28  ;;  %v6187_v3 = vld [vmem:[#allocation4 + $0x9d8] sm:$0xff]   ;;  %v6191_v7 = vld [vmem:[#allocation4 + $0x9e0] sm:$0xff]   ;;  %v6194_v10 = vld [vmem:[#allocation4 + $0x928] sm:$0xff]  }
 0x168   :  { %5576 = vmatprep.subr.bf16.mxu1 %v6165_v31  ;;  %v6212_v26 = vld [vmem:[#allocation4 + $0xa00] sm:$0xff]  }
 0x169   :  { %5555 = vmatpush3.bf16.msra.mxu0 %v6164_v30  ;;  %v6214_v28 = vld [vmem:[#allocation4 + $0xa80] sm:$0xff]   ;;  %v6215_v30 = vld [vmem:[#allocation4 + $0xa48] sm:$0xff]  }
 0x16a   :  { %5584 = vmatprep.subr.bf16.mxu0 %v6170_v35  ;;  %v6217_v35 = vld [vmem:[#allocation4 + $0xac8] sm:$0xff]  }
 0x16b   :  { %5577 = vmatpush3.bf16.msra.mxu1 %v6169_v34 }
 0x16c   :  { %4268 = vmatmul.mubr.bf16.vlgmr.msra.gmra.mrb[32].mxu0 %v6166_v32  ;;  %5606 = vmatprep.subr.bf16.mxu1 %v6175_v39  ;;  %v6216_v32 = vld [vmem:[#allocation4 + $0xa08] sm:$0xff]  }
 0x16d   :  { %5585 = vmatpush3.bf16.msra.mxu0 %v6174_v38  ;;  %4349 = vmatprep.mubr.bf16.mxu0 %v6206_v21 }
 0x16e   :  { %4309 = vmatmul.mubr.bf16.vlgmr.msra.gmra.mrb[32].mxu1 %v6171_v36  ;;  %5586 = vmatprep.subr.bf16.mxu0 %v6177_v43  ;;  %v6220_v43 = vld [vmem:[#allocation4 + $0xa10] sm:$0xff]  }
 0x16f   :  { %5607 = vmatpush3.bf16.msra.mxu1 %v6176_v41  ;;  %4390 = vmatprep.mubr.bf16.mxu1 %v6211_v25 }
 0x170   :  { %5608 = vmatprep.subr.bf16.mxu1 %v6179_v48 }
 0x171   :  { %5587 = vmatpush3.bf16.msra.mxu0 %v6178_v46  ;;  %v6221_v46 = vld [vmem:[#allocation4 + $0xad0] sm:$0xff]  }
 0x172   :  { %5588 = vmatprep.subr.bf16.mxu0 %v6181_v54 }
 0x173   :  { %5609 = vmatpush3.bf16.msra.mxu1 %v6180_v51 }
 0x174   :  { %5610 = vmatprep.subr.bf16.mxu1 %v6183_v60  ;;  %v6230_v60 = vld [vmem:[#allocation4 + $0xaa0] sm:$0xff]  }
 0x175   :  { %5589 = vmatpush3.bf16.msra.mxu0 %v6182_v57  ;;  %v6227_v57 = vld [vmem:[#allocation4 + $0xa60] sm:$0xff]  }
 0x176   :  { %5590 = vmatprep.subr.bf16.mxu0 %v6185_v0  ;;  %v6234_v0 = vld [vmem:[#allocation4 + $0xaa8] sm:$0xff]  }
 0x177   :  { %5611 = vmatpush3.bf16.msra.mxu1 %v6184_v63  ;;  %v6233_v63 = vld [vmem:[#allocation4 + $0xae8] sm:$0xff]  }
 0x178   :  { %5612 = vmatprep.subr.bf16.mxu1 %v6187_v3  ;;  %v6237_v3 = vld [vmem:[#allocation4 + $0xaf0] sm:$0xff]  }
 0x179   :  { %5591 = vmatpush3.bf16.msra.mxu0 %v6186_v2  ;;  %v6236_v2 = vld [vmem:[#allocation4 + $0xa30] sm:$0xff]  }
 0x17a   :  { %5592 = vmatprep.subr.bf16.mxu0 %v6189_v5  ;;  %v6239_v5 = vld [vmem:[#allocation4 + $0xa78] sm:$0xff]  }
 0x17b   :  { %5613 = vmatpush3.bf16.msra.mxu1 %v6188_v4  ;;  %v6238_v4 = vld [vmem:[#allocation4 + $0xab0] sm:$0xff]  }
 0x17c   :  { %5614 = vmatprep.subr.bf16.mxu1 %v6191_v7  ;;  %v6241_v7 = vld [vmem:[#allocation4 + $0xaf8] sm:$0xff]  }
 0x17d   :  { %5593 = vmatpush3.bf16.msra.mxu0 %v6190_v6  ;;  %v6240_v6 = vld [vmem:[#allocation4 + $0xa38] sm:$0xff]  }
 0x17f   :  { %v5292_v40 = vpop.f32.mrb[8].mxu0  ;;  %5615 = vmatpush3.bf16.msra.mxu1 %v6192_v8  ;;  %v6242_v8 = vld [vmem:[#allocation2 + $0xa0] ss:$200 sps:$4 sm:$0xff]  }
 0x180   :  { %v5293_v42 = vpop.f32.mrb[9].mxu0  ;;  %5616 = vmatprep.subr.bf16.mxu1 %v6195_v11  ;;  %v6246_v11 = vld [vmem:[#allocation4 + $0xb40] sm:$0xff]  }
 0x181   :  { %v5294_v44 = vadd.f32 %v5293_v42, %v5292_v40  ;;  %v5295_v45 = vpop.f32.mrb[10].mxu0  ;;  %v5314_v47 = vpop.f32.mrb[8].mxu1  ;;  %v6219_v40 = vld [vmem:[#allocation4 + $0xa50] sm:$0xff]  }
 0x182   :  { %v5296_v50 = vpop.f32.mrb[11].mxu0  ;;  %v5315_v53 = vpop.f32.mrb[9].mxu1 }
 0x183   :  { %v3778_v49 = vadd.f32 %v5294_v44, %v6494_v9  ;;  %v5297_v52 = vadd.f32 %v5296_v50, %v5295_v45  ;;  %v5316_v55 = vadd.f32 %v5315_v53, %v5314_v47  ;;  %v5317_v56 = vpop.f32.mrb[10].mxu1  ;;  %v6193_v9 = vld [vmem:[#allocation4 + $0x968] sm:$0xff]   ;;  %5617 = vmatpush3.bf16.msra.mxu1 %v6196_v12  ;;  %v6224_v53 = vld [vmem:[#allocation4 + $0xa18] sm:$0xff]  }
 0x184   :  { %v5318_v59 = vpop.f32.mrb[11].mxu1  ;;  %5594 = vmatprep.subr.bf16.mxu0 %v6193_v9  ;;  %5618 = vmatprep.subr.bf16.mxu1 %v6199_v15  ;;  %v6244_v9 = vld [vmem:[#allocation2 + $0xa4] ss:$200 sps:$4 sm:$0xff]   ;;  %v6247_v12 = vld [vmem:[#allocation2 + $0xa8] ss:$200 sps:$4 sm:$0xff]  }
 0x185   :  { %v3781_v58 = vadd.f32 %v5297_v52, %v6496_v13  ;;  %v6500_v61 = vadd.f32 %v5316_v55, %v3778_v49  ;;  %v5319_v62 = vadd.f32 %v5318_v59, %v5317_v56  ;;  %5595 = vmatpush3.bf16.msra.mxu0 %v6194_v10  ;;  %v6197_v13 = vld [vmem:[#allocation4 + $0x970] sm:$0xff]   ;;  %v6223_v52 = vld [vmem:[#allocation4 + $0xa58] sm:$0xff]   ;;  %v6229_v59 = vld [vmem:[#allocation4 + $0xae0] sm:$0xff]  }
 0x186   :  { %5596 = vmatprep.subr.bf16.mxu0 %v6197_v13  ;;  %v6222_v49 = vld [vmem:[#allocation4 + $0xa90] sm:$0xff]   ;;  %v6225_v55 = vld [vmem:[#allocation4 + $0xad8] sm:$0xff]   ;;  %v6251_v15 = vld [vmem:[#allocation4 + $0xbc0] sm:$0xff]  }
 0x187   :  { %v6502_v1 = vadd.f32 %v5319_v62, %v3781_v58  ;;  %5619 = vmatpush3.bf16.msra.mxu1 %v6200_v16  ;;  %v6226_v56 = vld [vmem:[#allocation4 + $0xa98] sm:$0xff]   ;;  %v6228_v58 = vld [vmem:[#allocation4 + $0xa20] sm:$0xff]   ;;  %v6232_v62 = vld [vmem:[#allocation4 + $0xa28] sm:$0xff]  }
 0x188   :  { %5620 = vmatprep.subr.bf16.mxu1 %v6203_v19  ;;  %v6245_v10 = vld [vmem:[#allocation4 + $0xab8] sm:$0xff]   ;;  %v6253_v19 = vld [vmem:[#allocation4 + $0xb48] sm:$0xff]  }
 0x189   :  { %5597 = vmatpush3.bf16.msra.mxu0 %v6198_v14  ;;  %v6249_v13 = vld [vmem:[#allocation2 + $0xac] ss:$200 sps:$4 sm:$0xff]  }
 0x18a   :  { %5598 = vmatprep.subr.bf16.mxu0 %v6201_v17  ;;  %v6250_v14 = vld [vmem:[#allocation4 + $0xb00] sm:$0xff]  }
 0x18b   :  { %5621 = vmatpush3.bf16.msra.mxu1 %v6207_v22  ;;  %v6252_v17 = vld [vmem:[#allocation4 + $0xb80] sm:$0xff]   ;;  %v6254_v22 = vld [vmem:[#allocation4 + $0xb08] sm:$0xff]  }
 0x18c   :  { %5650 = vmatprep.subr.bf16.mxu1 %v6213_v27 }
 0x18d   :  { %5599 = vmatpush3.bf16.msra.mxu0 %v6202_v18 }
 0x18e   :  { %5628 = vmatprep.subr.bf16.mxu0 %v6208_v23  ;;  %4391 = vmatmul.mubr.bf16.vlgmr.msra.gmra.mrb[36].mxu1 %v6209_v24  ;;  %v6255_v24 = vld [vmem:[#allocation4 + $0xbc8] sm:$0xff]  }
 0x18f   :  { %5651 = vmatpush3.bf16.msra.mxu1 %v6214_v28  ;;  %4472 = vmatprep.mubr.bf16.mxu1 %v6249_v13  ;;  %v6256_v28 = vld [vmem:[#allocation4 + $0xb88] sm:$0xff]   ;;  %v6292_v13 = vld [vmem:[#allocation4 + $0xc10] sm:$0xff]  }
 0x190   :  { %4350 = vmatmul.mubr.bf16.vlgmr.msra.gmra.mrb[36].mxu0 %v6204_v20  ;;  %5652 = vmatprep.subr.bf16.mxu1 %v6217_v35 }
 0x191   :  { %5629 = vmatpush3.bf16.msra.mxu0 %v6212_v26  ;;  %4431 = vmatprep.mubr.bf16.mxu0 %v6244_v9 }
 0x192   :  { %5630 = vmatprep.subr.bf16.mxu0 %v6215_v30  ;;  %v6257_v30 = vld [vmem:[#allocation4 + $0xb50] sm:$0xff]  }
 0x193   :  { %5653 = vmatpush3.bf16.msra.mxu1 %v6218_v37 }
 0x194   :  { %5654 = vmatprep.subr.bf16.mxu1 %v6221_v46  ;;  %v6266_v46 = vld [vmem:[#allocation4 + $0xb20] sm:$0xff]  }
 0x195   :  { %5631 = vmatpush3.bf16.msra.mxu0 %v6216_v32 }
 0x196   :  { %5632 = vmatprep.subr.bf16.mxu0 %v6219_v40  ;;  %v6261_v40 = vld [vmem:[#allocation4 + $0xb58] sm:$0xff]  }
 0x197   :  { %5655 = vmatpush3.bf16.msra.mxu1 %v6222_v49  ;;  %v6269_v49 = vld [vmem:[#allocation4 + $0xb68] sm:$0xff]  }
 0x198   :  { %5656 = vmatprep.subr.bf16.mxu1 %v6225_v55  ;;  %v6275_v55 = vld [vmem:[#allocation4 + $0xbf0] sm:$0xff]  }
 0x199   :  { %5633 = vmatpush3.bf16.msra.mxu0 %v6220_v43  ;;  %v6263_v43 = vld [vmem:[#allocation4 + $0xbd8] sm:$0xff]  }
 0x19a   :  { %5634 = vmatprep.subr.bf16.mxu0 %v6223_v52  ;;  %v6272_v52 = vld [vmem:[#allocation4 + $0xba8] sm:$0xff]  }
 0x19b   :  { %5657 = vmatpush3.bf16.msra.mxu1 %v6226_v56  ;;  %v6276_v56 = vld [vmem:[#allocation4 + $0xbb0] sm:$0xff]  }
 0x19c   :  { %5658 = vmatprep.subr.bf16.mxu1 %v6229_v59  ;;  %v6279_v59 = vld [vmem:[#allocation4 + $0xbf8] sm:$0xff]  }
 0x19d   :  { %5635 = vmatpush3.bf16.msra.mxu0 %v6224_v53  ;;  %v6273_v53 = vld [vmem:[#allocation4 + $0xb70] sm:$0xff]  }
 0x19e   :  { %5636 = vmatprep.subr.bf16.mxu0 %v6227_v57  ;;  %v6277_v57 = vld [vmem:[#allocation4 + $0xb78] sm:$0xff]  }
 0x19f   :  { %v5336_v29 = vpop.f32.mrb[12].mxu0  ;;  %5659 = vmatpush3.bf16.msra.mxu1 %v6230_v60  ;;  %v6280_v60 = vld [vmem:[#allocation2 + $0xb0] ss:$200 sps:$4 sm:$0xff]  }
 0x1a0   :  { %v5337_v31 = vpop.f32.mrb[13].mxu0  ;;  %5660 = vmatprep.subr.bf16.mxu1 %v6233_v63  ;;  %v6284_v63 = vld [vmem:[#allocation4 + $0xc40] sm:$0xff]  }
 0x1a1   :  { %v5338_v33 = vadd.f32 %v5337_v31, %v5336_v29  ;;  %v5339_v34 = vpop.f32.mrb[14].mxu0  ;;  %v5358_v36 = vpop.f32.mrb[12].mxu1  ;;  %5637 = vmatpush3.bf16.msra.mxu0 %v6228_v58  ;;  %v6278_v58 = vld [vmem:[#allocation4 + $0xb38] sm:$0xff]  }
 0x1a2   :  { %v5340_v39 = vpop.f32.mrb[15].mxu0  ;;  %v5359_v42 = vpop.f32.mrb[13].mxu1 }
 0x1a3   :  { %v3860_v38 = vadd.f32 %v5338_v33, %v6500_v61  ;;  %v5341_v41 = vadd.f32 %v5340_v39, %v5339_v34  ;;  %v5360_v44 = vadd.f32 %v5359_v42, %v5358_v36  ;;  %v5361_v45 = vpop.f32.mrb[14].mxu1  ;;  %v6231_v61 = vld [vmem:[#allocation4 + $0xa68] sm:$0xff]   ;;  %5661 = vmatpush3.bf16.msra.mxu1 %v6234_v0  ;;  %v6258_v34 = vld [vmem:[#allocation4 + $0xb10] sm:$0xff]   ;;  %v6262_v42 = vld [vmem:[#allocation4 + $0xb18] sm:$0xff]  }
 0x1a4   :  { %v5362_v48 = vpop.f32.mrb[15].mxu1  ;;  %5638 = vmatprep.subr.bf16.mxu0 %v6231_v61  ;;  %5662 = vmatprep.subr.bf16.mxu1 %v6237_v3  ;;  %v6259_v36 = vld [vmem:[#allocation4 + $0xbd0] sm:$0xff]   ;;  %v6282_v61 = vld [vmem:[#allocation2 + $0xb4] ss:$200 sps:$4 sm:$0xff]  }
 0x1a5   :  { %v3863_v47 = vadd.f32 %v5341_v41, %v6502_v1  ;;  %v6506_v50 = vadd.f32 %v5360_v44, %v3860_v38  ;;  %v5363_v51 = vadd.f32 %v5362_v48, %v5361_v45  ;;  %5639 = vmatpush3.bf16.msra.mxu0 %v6232_v62  ;;  %v6235_v1 = vld [vmem:[#allocation4 + $0xa70] sm:$0xff]   ;;  %v6264_v44 = vld [vmem:[#allocation4 + $0xb98] sm:$0xff]   ;;  %v6265_v45 = vld [vmem:[#allocation4 + $0xb60] sm:$0xff]  }
 0x1a6   :  { %5640 = vmatprep.subr.bf16.mxu0 %v6235_v1  ;;  %v6260_v39 = vld [vmem:[#allocation4 + $0xb90] sm:$0xff]   ;;  %v6268_v48 = vld [vmem:[#allocation4 + $0xba0] sm:$0xff]   ;;  %v6283_v62 = vld [vmem:[#allocation4 + $0xbb8] sm:$0xff]  }
 0x1a7   :  { %v6508_v54 = vadd.f32 %v5363_v51, %v3863_v47  ;;  %5663 = vmatpush3.bf16.msra.mxu1 %v6238_v4  ;;  %v6267_v47 = vld [vmem:[#allocation4 + $0xbe0] sm:$0xff]   ;;  %v6271_v51 = vld [vmem:[#allocation4 + $0xbe8] sm:$0xff]  }
 0x1a8   :  { %5664 = vmatprep.subr.bf16.mxu1 %v6241_v7  ;;  %v6285_v0 = vld [vmem:[#allocation2 + $0xb8] ss:$200 sps:$4 sm:$0xff]   ;;  %v6287_v1 = vld [vmem:[#allocation2 + $0xbc] ss:$200 sps:$4 sm:$0xff]  }
 0x1a9   :  { %5641 = vmatpush3.bf16.msra.mxu0 %v6236_v2  ;;  %v6288_v2 = vld [vmem:[#allocation4 + $0xc00] sm:$0xff]   ;;  %v6289_v3 = vld [vmem:[#allocation4 + $0xc48] sm:$0xff]   ;;  %v6291_v7 = vld [vmem:[#allocation4 + $0xc50] sm:$0xff]  }
 0x1aa   :  { %5642 = vmatprep.subr.bf16.mxu0 %v6239_v5  ;;  %v6290_v5 = vld [vmem:[#allocation4 + $0xc08] sm:$0xff]  }
 0x1ab   :  { %5665 = vmatpush3.bf16.msra.mxu1 %v6245_v10 }
 0x1ac   :  { %5694 = vmatprep.subr.bf16.mxu1 %v6251_v15 }
 0x1ad   :  { %5643 = vmatpush3.bf16.msra.mxu0 %v6240_v6 }
 0x1ae   :  { %5672 = vmatprep.subr.bf16.mxu0 %v6246_v11  ;;  %4473 = vmatmul.mubr.bf16.vlgmr.msra.gmra.mrb[40].mxu1 %v6247_v12 }
 0x1af   :  { %5695 = vmatpush3.bf16.msra.mxu1 %v6252_v17  ;;  %4554 = vmatprep.mubr.bf16.mxu1 %v6287_v1 }
 0x1b0   :  { %4432 = vmatmul.mubr.bf16.vlgmr.msra.gmra.mrb[40].mxu0 %v6242_v8  ;;  %5696 = vmatprep.subr.bf16.mxu1 %v6255_v24  ;;  %v6295_v24 = vld [vmem:[#allocation4 + $0xc60] sm:$0xff]  }
 0x1b1   :  { %5673 = vmatpush3.bf16.msra.mxu0 %v6250_v14  ;;  %4513 = vmatprep.mubr.bf16.mxu0 %v6282_v61 }
 0x1b2   :  { %5674 = vmatprep.subr.bf16.mxu0 %v6253_v19 }
 0x1b3   :  { %5697 = vmatpush3.bf16.msra.mxu1 %v6256_v28  ;;  %v6305_v28 = vld [vmem:[#allocation2 + $0xc4] ss:$200 sps:$4 sm:$0xff]  }
 0x1b4   :  { %5698 = vmatprep.subr.bf16.mxu1 %v6259_v36 }
 0x1b5   :  { %5675 = vmatpush3.bf16.msra.mxu0 %v6254_v22 }
 0x1b6   :  { %5676 = vmatprep.subr.bf16.mxu0 %v6257_v30  ;;  %v6299_v30 = vld [vmem:[#allocation4 + $0xc70] sm:$0xff]  }
 0x1b7   :  { %5699 = vmatpush3.bf16.msra.mxu1 %v6260_v39 }
 0x1b8   :  { %5700 = vmatprep.subr.bf16.mxu1 %v6263_v43 }
 0x1b9   :  { %5677 = vmatpush3.bf16.msra.mxu0 %v6258_v34  ;;  %v6303_v34 = vld [vmem:[#allocation2 + $0xc0] ss:$200 sps:$4 sm:$0xff]  }
 0x1ba   :  { %5678 = vmatprep.subr.bf16.mxu0 %v6261_v40 }
 0x1bb   :  { %5701 = vmatpush3.bf16.msra.mxu1 %v6264_v44 }
 0x1bc   :  { %5702 = vmatprep.subr.bf16.mxu1 %v6267_v47 }
 0x1bd   :  { %5679 = vmatpush3.bf16.msra.mxu0 %v6262_v42 }
 0x1be   :  { %5680 = vmatprep.subr.bf16.mxu0 %v6265_v45 }
 0x1bf   :  { %v5380_v16 = vpop.f32.mrb[16].mxu0  ;;  %5703 = vmatpush3.bf16.msra.mxu1 %v6268_v48 }
 0x1c0   :  { %v5381_v18 = vpop.f32.mrb[17].mxu0  ;;  %5704 = vmatprep.subr.bf16.mxu1 %v6271_v51 }
 0x1c1   :  { %v5382_v20 = vadd.f32 %v5381_v18, %v5380_v16  ;;  %v5383_v21 = vpop.f32.mrb[18].mxu0  ;;  %v5402_v26 = vpop.f32.mrb[16].mxu1  ;;  %5681 = vmatpush3.bf16.msra.mxu0 %v6266_v46  ;;  %v6293_v16 = vld [vmem:[#allocation4 + $0xc58] sm:$0xff]  }
 0x1c2   :  { %v5384_v23 = vpop.f32.mrb[19].mxu0  ;;  %v5403_v29 = vpop.f32.mrb[17].mxu1  ;;  %5682 = vmatprep.subr.bf16.mxu0 %v6269_v49 }
 0x1c3   :  { %v3942_v25 = vadd.f32 %v5382_v20, %v6506_v50  ;;  %v5385_v27 = vadd.f32 %v5384_v23, %v5383_v21  ;;  %v5404_v32 = vadd.f32 %v5403_v29, %v5402_v26  ;;  %v5405_v33 = vpop.f32.mrb[18].mxu1  ;;  %v6270_v50 = vld [vmem:[#allocation4 + $0xb28] sm:$0xff]   ;;  %5705 = vmatpush3.bf16.msra.mxu1 %v6272_v52  ;;  %v6294_v23 = vld [vmem:[#allocation4 + $0xc18] sm:$0xff]   ;;  %v6296_v26 = vld [vmem:[#allocation4 + $0xc20] sm:$0xff]  }
 0x1c4   :  { %v5406_v35 = vpop.f32.mrb[19].mxu1  ;;  %5706 = vmatprep.subr.bf16.mxu1 %v6275_v55  ;;  %v6298_v29 = vld [vmem:[#allocation4 + $0xc28] sm:$0xff]  }
 0x1c5   :  { %v3945_v31 = vadd.f32 %v5385_v27, %v6508_v54  ;;  %v6512_v37 = vadd.f32 %v5404_v32, %v3942_v25  ;;  %v5407_v38 = vadd.f32 %v5406_v35, %v5405_v33  ;;  %5683 = vmatpush3.bf16.msra.mxu0 %v6270_v50  ;;  %v6274_v54 = vld [vmem:[#allocation4 + $0xb30] sm:$0xff]   ;;  %v6297_v27 = vld [vmem:[#allocation4 + $0xc68] sm:$0xff]   ;;  %v6301_v32 = vld [vmem:[#allocation4 + $0xc78] sm:$0xff]  }
 0x1c6   :  { %5684 = vmatprep.subr.bf16.mxu0 %v6273_v53  ;;  %v6302_v33 = vld [vmem:[#allocation4 + $0xc38] sm:$0xff]  }
 0x1c7   :  { %v6514_v41 = vadd.f32 %v5407_v38, %v3945_v31  ;;  %5707 = vmatpush3.bf16.msra.mxu1 %v6276_v56  ;;  %v6300_v31 = vld [vmem:[#allocation4 + $0xc30] sm:$0xff]  }
 0x1c8   :  { %5708 = vmatprep.subr.bf16.mxu1 %v6279_v59 }
 0x1c9   :  { %5685 = vmatpush3.bf16.msra.mxu0 %v6274_v54 }
 0x1ca   :  { %5686 = vmatprep.subr.bf16.mxu0 %v6277_v57 }
 0x1cb   :  { %5709 = vmatpush3.bf16.msra.mxu1 %v6283_v62 }
 0x1cd   :  { %5687 = vmatpush3.bf16.msra.mxu0 %v6278_v58 }
 0x1ce   :  { %5716 = vmatprep.subr.bf16.mxu0 %v6284_v63  ;;  %4555 = vmatmul.mubr.bf16.vlgmr.msra.gmra.mrb[44].mxu1 %v6285_v0 }
 0x1d0   :  { %4514 = vmatmul.mubr.bf16.vlgmr.msra.gmra.mrb[44].mxu0 %v6280_v60 }
 0x1d1   :  { %5717 = vmatpush3.bf16.msra.mxu0 %v6288_v2  ;;  %4595 = vmatprep.mubr.bf16.mxu0 %v6305_v28 }
 0x1d2   :  { %5718 = vmatprep.subr.bf16.mxu0 %v6289_v3  ;;  %v4606_v3 = vld [vmem:[%s6581_s3] sm:$0xff] }
 0x1d5   :  { %5719 = vmatpush3.bf16.msra.mxu0 %v6290_v5  ;;  %v4608_v5 = vld [vmem:[%s6581_s3 + $0x10] sm:$0xff] }
 0x1d6   :  { %5720 = vmatprep.subr.bf16.mxu0 %v6291_v7  ;;  %v4609_v7 = vld [vmem:[%s6581_s3 + $0x18] sm:$0xff] }
 0x1d9   :  { %5721 = vmatpush3.bf16.msra.mxu0 %v6292_v13  ;;  %v4613_v13 = vld [vmem:[%s6581_s3 + $0x38] sm:$0xff] }
 0x1da   :  { %5722 = vmatprep.subr.bf16.mxu0 %v6293_v16  ;;  %v4615_v16 = vld [vmem:[%s6581_s3 + $0x48] sm:$0xff] }
 0x1dd   :  { %5723 = vmatpush3.bf16.msra.mxu0 %v6294_v23 }
 0x1de   :  { %5724 = vmatprep.subr.bf16.mxu0 %v6295_v24 }
 0x1df   :  { %v5424_v4 = vpop.f32.mrb[20].mxu0 }
 0x1e0   :  { %v5425_v6 = vpop.f32.mrb[21].mxu0 }
 0x1e1   :  { %v5426_v8 = vadd.f32 %v5425_v6, %v5424_v4  ;;  %v5427_v9 = vpop.f32.mrb[22].mxu0  ;;  %v5446_v10 = vpop.f32.mrb[20].mxu1  ;;  %5725 = vmatpush3.bf16.msra.mxu0 %v6296_v26  ;;  %v4607_v4 = vld [vmem:[%s6581_s3 + $0x8] sm:$0xff] }
 0x1e2   :  { %v5428_v12 = vpop.f32.mrb[23].mxu0  ;;  %v5447_v15 = vpop.f32.mrb[21].mxu1  ;;  %5726 = vmatprep.subr.bf16.mxu0 %v6297_v27  ;;  %v5791_v6 = vpack.c.bf16 %v4607_v4, %v4606_v3 }
 0x1e3   :  { %v4024_v11 = vadd.f32 %v5426_v8, %v6512_v37  ;;  %v5429_v14 = vadd.f32 %v5428_v12, %v5427_v9  ;;  %v5448_v17 = vadd.f32 %v5447_v15, %v5446_v10  ;;  %v5449_v18 = vpop.f32.mrb[22].mxu1  ;;  %v5795_v8 = vpack.c.bf16 %v4609_v7, %v4608_v5  ;;  %v4610_v9 = vld [vmem:[%s6581_s3 + $0x20] sm:$0xff]  ;;  %v4611_v10 = vld [vmem:[%s6581_s3 + $0x28] sm:$0xff]  ;;  %v4612_v12 = vld [vmem:[%s6581_s3 + $0x30] sm:$0xff] }
 0x1e4   :  { %v5450_v20 = vpop.f32.mrb[23].mxu1  ;;  %5792 = vmatprep.subr.bf16.mxu1 %v5791_v6  ;;  %v4614_v15 = vld [vmem:[%s6581_s3 + $0x40] sm:$0xff] }
 0x1e5   :  { %v4027_v19 = vadd.f32 %v5429_v14, %v6514_v41  ;;  %v4065_v21 = vadd.f32 %v5448_v17, %v4024_v11  ;;  %v5451_v22 = vadd.f32 %v5450_v20, %v5449_v18  ;;  %5727 = vmatpush3.bf16.msra.mxu0 %v6298_v29  ;;  %5794 = vmatpush3.bf16.msra.mxu1 %v5791_v6  ;;  %v4617_v20 = vld [vmem:[%s6581_s3 + $0x58] sm:$0xff] }
 0x1e6   :  { %5728 = vmatprep.subr.bf16.mxu0 %v6299_v30  ;;  %5796 = vmatprep.subr.bf16.mxu1 %v5795_v8  ;;  %v5799_v11 = vpack.c.bf16 %v4611_v10, %v4610_v9  ;;  %v5803_v14 = vpack.c.bf16 %v4613_v13, %v4612_v12  ;;  %v5807_v17 = vpack.c.bf16 %v4615_v16, %v4614_v15 }
 0x1e7   :  { %v4068_v25 = vadd.f32 %v5451_v22, %v4027_v19  ;;  %v4616_v19 = vld [vmem:[%s6581_s3 + $0x50] sm:$0xff] }
 0x1e9   :  { %5729 = vmatpush3.bf16.msra.mxu0 %v6300_v31  ;;  %5798 = vmatpush3.bf16.msra.mxu1 %v5795_v8 }
 0x1ea   :  { %5730 = vmatprep.subr.bf16.mxu0 %v6301_v32  ;;  %5800 = vmatprep.subr.bf16.mxu1 %v5799_v11 }
 0x1ed   :  { %5731 = vmatpush3.bf16.msra.mxu0 %v6302_v33  ;;  %5802 = vmatpush3.bf16.msra.mxu1 %v5799_v11 }
 0x1ee   :  { %5804 = vmatprep.subr.bf16.mxu1 %v5803_v14 }
 0x1f0   :  { %4596 = vmatmul.mubr.bf16.vlgmr.msra.gmra.mrb[48].mxu0 %v6303_v34 }
 0x1f1   :  { %5806 = vmatpush3.bf16.msra.mxu1 %v5803_v14 }
 0x1f2   :  { %5808 = vmatprep.subr.bf16.mxu1 %v5807_v17 }
 0x1f5   :  { %5810 = vmatpush3.bf16.msra.mxu1 %v5807_v17 }
 0x1ff   :  { %v5468_v35 = vpop.f32.mrb[24].mxu0 }
 0x200   :  { %v5469_v36 = vpop.f32.mrb[25].mxu0 }
 0x201   :  { %v5470_v37 = vadd.f32 %v5469_v36, %v5468_v35  ;;  %v5471_v38 = vpop.f32.mrb[26].mxu0  ;;  %v5490_v39 = vpop.f32.mrb[24].mxu1 }
 0x202   :  { %v5472_v40 = vpop.f32.mrb[27].mxu0  ;;  %v5491_v43 = vpop.f32.mrb[25].mxu1 }
 0x203   :  { %v4106_v41 = vadd.f32 %v5470_v37, %v4065_v21  ;;  %v5473_v42 = vadd.f32 %v5472_v40, %v5471_v38  ;;  %v5492_v44 = vadd.f32 %v5491_v43, %v5490_v39  ;;  %v5493_v45 = vpop.f32.mrb[26].mxu1  ;;  %v4618_v37 = vld [vmem:[%s6581_s3 + $0x60] sm:$0xff]  ;;  %v4619_v38 = vld [vmem:[%s6581_s3 + $0x68] sm:$0xff]  ;;  %v4620_v40 = vld [vmem:[%s6581_s3 + $0x70] sm:$0xff] }
 0x204   :  { %v5494_v47 = vpop.f32.mrb[27].mxu1  ;;  %v5815_v39 = vpack.c.bf16 %v4619_v38, %v4618_v37  ;;  %v5187_v37 = vld [vmem:[#allocation7] ss:$0 sm:$0xff] }
 0x205   :  { %v4109_v46 = vadd.f32 %v5473_v42, %v4068_v25  ;;  %v4147_v48 = vadd.f32 %v5492_v44, %v4106_v41  ;;  %v5495_v49 = vadd.f32 %v5494_v47, %v5493_v45  ;;  %v5811_v25 = vpack.c.bf16 %v4617_v20, %v4616_v19  ;;  %v4621_v41 = vld [vmem:[%s6581_s3 + $0x78] sm:$0xff] }
 0x206   :  { %v5819_v42 = vpack.c.bf16 %v4621_v41, %v4620_v40 }
 0x207   :  { %v4150_v50 = vadd.f32 %v5495_v49, %v4109_v46  ;;  %5812 = vmatprep.subr.bf16.mxu1 %v5811_v25 }
 0x208   :  { %5814 = vmatpush3.bf16.msra.mxu1 %v5811_v25 }
 0x209   :  { %5816 = vmatprep.subr.bf16.mxu1 %v5815_v39 }
 0x20c   :  { %5818 = vmatpush3.bf16.msra.mxu1 %v5815_v39 }
 0x20d   :  { %5820 = vmatprep.subr.bf16.mxu1 %v5819_v42 }
 0x210   :  { %5822 = vmatpush3.bf16.msra.mxu1 %v5819_v42 }
 0x21f   :  { %v5512_v51 = vpop.f32.mrb[28].mxu0 }
 0x220   :  { %v5513_v52 = vpop.f32.mrb[29].mxu0 }
 0x221   :  { %v5514_v53 = vadd.f32 %v5513_v52, %v5512_v51  ;;  %v5515_v54 = vpop.f32.mrb[30].mxu0  ;;  %v5534_v55 = vpop.f32.mrb[28].mxu1 }
 0x222   :  { %v5516_v56 = vpop.f32.mrb[31].mxu0  ;;  %v5535_v59 = vpop.f32.mrb[29].mxu1 }
 0x223   :  { %v4188_v57 = vadd.f32 %v5514_v53, %v4147_v48  ;;  %v5517_v58 = vadd.f32 %v5516_v56, %v5515_v54  ;;  %v5536_v60 = vadd.f32 %v5535_v59, %v5534_v55  ;;  %v5537_v61 = vpop.f32.mrb[30].mxu1 }
 0x224   :  { %v5538_v63 = vpop.f32.mrb[31].mxu1 }
 0x225   :  { %v4191_v62 = vadd.f32 %v5517_v58, %v4150_v50  ;;  %v4229_v0 = vadd.f32 %v5536_v60, %v4188_v57  ;;  %v5539_v1 = vadd.f32 %v5538_v63, %v5537_v61 }
 0x227   :  { %v4232_v2 = vadd.f32 %v5539_v1, %v4191_v62 }
 0x23f   :  { %v5556_v18 = vpop.f32.mrb[32].mxu0 }
 0x240   :  { %v5557_v21 = vpop.f32.mrb[33].mxu0 }
 0x241   :  { %v5558_v22 = vadd.f32 %v5557_v21, %v5556_v18  ;;  %v5559_v23 = vpop.f32.mrb[34].mxu0  ;;  %v5578_v27 = vpop.f32.mrb[32].mxu1 }
 0x242   :  { %v5560_v24 = vpop.f32.mrb[35].mxu0  ;;  %v5579_v29 = vpop.f32.mrb[33].mxu1 }
 0x243   :  { %v4270_v26 = vadd.f32 %v5558_v22, %v4229_v0  ;;  %v5561_v28 = vadd.f32 %v5560_v24, %v5559_v23  ;;  %v5580_v31 = vadd.f32 %v5579_v29, %v5578_v27  ;;  %v5581_v32 = vpop.f32.mrb[34].mxu1 }
 0x244   :  { %v5582_v33 = vpop.f32.mrb[35].mxu1 }
 0x245   :  { %v4273_v30 = vadd.f32 %v5561_v28, %v4232_v2  ;;  %v4311_v34 = vadd.f32 %v5580_v31, %v4270_v26  ;;  %v5583_v35 = vadd.f32 %v5582_v33, %v5581_v32 }
 0x247   :  { %v4314_v36 = vadd.f32 %v5583_v35, %v4273_v30 }
 0x261   :  { %v5622_v47 = vpop.f32.mrb[36].mxu1 }
 0x262   :  { %v5623_v51 = vpop.f32.mrb[37].mxu1 }
 0x263   :  { %v5600_v43 = vpop.f32.mrb[36].mxu0  ;;  %v5624_v52 = vadd.f32 %v5623_v51, %v5622_v47  ;;  %v5625_v53 = vpop.f32.mrb[38].mxu1 }
 0x264   :  { %v5601_v44 = vpop.f32.mrb[37].mxu0  ;;  %v5626_v55 = vpop.f32.mrb[39].mxu1 }
 0x265   :  { %v5602_v45 = vadd.f32 %v5601_v44, %v5600_v43  ;;  %v5603_v46 = vpop.f32.mrb[38].mxu0  ;;  %v5627_v57 = vadd.f32 %v5626_v55, %v5625_v53 }
 0x266   :  { %v5604_v48 = vpop.f32.mrb[39].mxu0 }
 0x267   :  { %v4352_v49 = vadd.f32 %v5602_v45, %v4311_v34  ;;  %v5605_v50 = vadd.f32 %v5604_v48, %v5603_v46 }
 0x269   :  { %v4355_v54 = vadd.f32 %v5605_v50, %v4314_v36  ;;  %v4393_v56 = vadd.f32 %v5624_v52, %v4352_v49 }
 0x26b   :  { %v4396_v58 = vadd.f32 %v5627_v57, %v4355_v54 }
 0x281   :  { %v5666_v63 = vpop.f32.mrb[40].mxu1 }
 0x282   :  { %v5667_v3 = vpop.f32.mrb[41].mxu1 }
 0x283   :  { %v5644_v59 = vpop.f32.mrb[40].mxu0  ;;  %v5668_v4 = vadd.f32 %v5667_v3, %v5666_v63  ;;  %v5669_v5 = vpop.f32.mrb[42].mxu1 }
 0x284   :  { %v5645_v60 = vpop.f32.mrb[41].mxu0  ;;  %v5670_v7 = vpop.f32.mrb[43].mxu1 }
 0x285   :  { %v5646_v61 = vadd.f32 %v5645_v60, %v5644_v59  ;;  %v5647_v62 = vpop.f32.mrb[42].mxu0  ;;  %v5671_v9 = vadd.f32 %v5670_v7, %v5669_v5 }
 0x286   :  { %v5648_v0 = vpop.f32.mrb[43].mxu0 }
 0x287   :  { %v4434_v1 = vadd.f32 %v5646_v61, %v4393_v56  ;;  %v5649_v2 = vadd.f32 %v5648_v0, %v5647_v62 }
 0x289   :  { %v4437_v6 = vadd.f32 %v5649_v2, %v4396_v58  ;;  %v4475_v8 = vadd.f32 %v5668_v4, %v4434_v1 }
 0x28b   :  { %v4478_v10 = vadd.f32 %v5671_v9, %v4437_v6 }
 0x2a1   :  { %v5710_v17 = vpop.f32.mrb[44].mxu1 }
 0x2a2   :  { %v5711_v19 = vpop.f32.mrb[45].mxu1 }
 0x2a3   :  { %v5688_v11 = vpop.f32.mrb[44].mxu0  ;;  %v5712_v21 = vadd.f32 %v5711_v19, %v5710_v17  ;;  %v5713_v22 = vpop.f32.mrb[46].mxu1 }
 0x2a4   :  { %v5689_v12 = vpop.f32.mrb[45].mxu0  ;;  %v5714_v23 = vpop.f32.mrb[47].mxu1 }
 0x2a5   :  { %v5690_v13 = vadd.f32 %v5689_v12, %v5688_v11  ;;  %v5691_v14 = vpop.f32.mrb[46].mxu0  ;;  %v5715_v25 = vadd.f32 %v5714_v23, %v5713_v22 }
 0x2a6   :  { %v5692_v15 = vpop.f32.mrb[47].mxu0 }
 0x2a7   :  { %v4516_v16 = vadd.f32 %v5690_v13, %v4475_v8  ;;  %v5693_v18 = vadd.f32 %v5692_v15, %v5691_v14 }
 0x2a9   :  { %v4519_v20 = vadd.f32 %v5693_v18, %v4478_v10  ;;  %v4557_v24 = vadd.f32 %v5712_v21, %v4516_v16 }
 0x2ab   :  { %v4560_v26 = vadd.f32 %v5715_v25, %v4519_v20 }
 0x2c3   :  { %v5732_v27 = vpop.f32.mrb[48].mxu0 }
 0x2c4   :  { %v5733_v28 = vpop.f32.mrb[49].mxu0 }
 0x2c5   :  { %v5734_v29 = vadd.f32 %v5733_v28, %v5732_v27  ;;  %v5735_v30 = vpop.f32.mrb[50].mxu0 }
 0x2c6   :  { %v5736_v31 = vpop.f32.mrb[51].mxu0 }
 0x2c7   :  { %v4598_v32 = vadd.f32 %v5734_v29, %v4557_v24  ;;  %v5737_v33 = vadd.f32 %v5736_v31, %v5735_v30 }
 0x2c9   :  { %v4604_v34 = vmax.f32 %v4598_v32, 0.0  ;;  %v4601_v35 = vadd.f32 %v5737_v33, %v4560_v26 }
 0x2cb   :  { %v4605_v36 = vmax.f32 %v4601_v35, 0.0  ;;  %5788 = vmatprep.mubr.f32.mxu1 %v4604_v34 }
 0x2cd   :  { %5789 = vmatmul.mubr.f32.vlgmr.msra.gmra.mrb[48].mxu1 %v4605_v36 }
 0x3a0   :  { %v5790_v38 = vpop.f32.mrb[48].mxu1 }
 0x3a1   :  { %v4695_v39 = vpop.f32.mrb[49].mxu1  ;;  %v4701_v41 = vadd.f32 %v5790_v38, %v5187_v37 }
 0x3a2   :  { %v4696_v40 = vadd.f32 %v5187_v37, %v4695_v39 }
 0x3a3   :  { %v4708_v43 = vsel %vm4704_vm0, %v4701_v41, -inf }
 0x3a4   :  { %v4705_v42 = vsel %vm4704_vm0, %v4696_v40, -inf }
 0x3a5   :  { %4706 = vmax.xlane.f32.xlu0 %v4705_v42 }
 0x3a9   :  { %4709 = vmax.xlane.f32.xlu0 %v4708_v43 }
 0x432   :  { %v4707_v44 = vpop.xlane.xlu0 %4706 }
 0x433   :  { %v4711_v45 = vsub.f32 %v4696_v40, %v4707_v44 }
 0x435   :  { %v4713_v46 = vmul.f32 1.442695, %v4711_v45 }
 0x436   :  { %v4710_v47 = vpop.xlane.xlu0 %4709 }
 0x437   :  { %6306 = vpow2.f32 %v4713_v46  ;;  %v4712_v48 = vsub.f32 %v4701_v41, %v4710_v47 }
 0x439   :  { %v4715_v49 = vmul.f32 1.442695, %v4712_v48 }
 0x43b   :  { %6308 = vpow2.f32 %v4715_v49 }
 0x441   :  { %v6307_v50 = vpop.eup %6306 }
 0x442   :  { %v4717_v51 = vsel %vm4704_vm0, %v6307_v50, 0.0 }
 0x443   :  { %4718 = vadd.xlane.f32.xlu1 %v4717_v51 }
 0x445   :  { %v6309_v52 = vpop.eup %6308 }
 0x446   :  { %v4720_v53 = vsel %vm4704_vm0, %v6309_v52, 0.0 }
 0x447   :  { %4721 = vadd.xlane.f32.xlu1 %v4720_v53 }
 0x4d0   :  { %v4719_v54 = vpop.xlane.xlu1 %4718 }
 0x4d1   :  { %6310 = vrcp.f32 %v4719_v54 }
 0x4d4   :  { %v4722_v55 = vpop.xlane.xlu1 %4721 }
 0x4d5   :  { %6312 = vrcp.f32 %v4722_v55 }
 0x4db   :  { %v6311_v56 = vpop.eup %6310 }
 0x4dc   :  { %v4724_v57 = vmul.f32 %v6311_v56, %v6307_v50 }
 0x4de   :  { %4727 = vst.msk [vmem:[%s6583_s5] sm:$0xff] %vm4704_vm0, %v4724_v57 }
 0x4df   :  { %v6313_v58 = vpop.eup %6312 }
 0x4e0   :  { %v4726_v59 = vmul.f32 %v6313_v58, %v6309_v52 }
 0x4e2   :  { %4728 = vst.msk [vmem:[%s6583_s5 + $0x8] sm:$0xff] %vm4704_vm0, %v4726_v59 }
 0x4e3   :  { %4733 = vsyncpa [#allocation3], 1 }
 0x4e4   :  { %4734 = vsyncpa [#allocation5], 1 }
 0x4e5   :  { %4735 = vsyncpa [#allocation8], 1 }

</bundles_post_ra>
